<compile_context>
chip_gen: v5e
topology: v5e:2x2
jax: 0.10.0
libtpu: 0.0.40
codegen_flags: <defaults>
</compile_context>

<pallas_src>
import math
import functools

import numpy as np
import jax
import jax.numpy as jnp
from jax import lax
from jax.experimental import pallas as pl
from jax.experimental.pallas import tpu as pltpu


def _build_constants(num_pos_feats, temperature, normalize, scale, H, W):
    """Trace-time (numpy) lane-dense constants over the 2P output feature axis
    ([pos_y features | pos_x features]).  All are (1, 1, 2P) float32."""
    P = num_pos_feats
    k = np.arange(P, dtype=np.float64)
    inv = 1.0 / (np.asarray(temperature, dtype=np.float64)
                 ** (2.0 * np.floor(k / 2.0) / P))            # 1 / dim_t
    phase = np.where((np.arange(P) % 2) == 1, np.pi / 2.0, 0.0)  # cos = sin(+pi/2)
    zeros = np.zeros(P, dtype=np.float64)
    ones = np.ones(P, dtype=np.float64)

    if normalize:
        eps = 1e-06
        y_norm = scale / (float(H) + eps)
        x_norm = scale / (float(W) + eps)
    else:
        y_norm = x_norm = 1.0

    F = 2 * P

    def lane_row(a, b):
        return np.concatenate([a, b]).astype(np.float32).reshape(1, 1, F)

    return dict(
        # mask=None path: normalization folded in, zero on the opposite half.
        scale_y_nm=lane_row(inv * y_norm, zeros),
        scale_x_nm=lane_row(zeros, inv * x_norm),
        # masked path: plain 1/dim_t, zero on the opposite half
        # (normalization is data-dependent, applied to y_embed/x_embed).
        scale_y_m=lane_row(inv, zeros),
        scale_x_m=lane_row(zeros, inv),
        phase2=lane_row(phase, phase),
        sel_y=lane_row(ones, zeros),
        sel_x=lane_row(zeros, ones),
    )


def _pe_nomask_kernel(scale_y_ref, scale_x_ref, phase_ref, sel_y_ref,
                      sel_x_ref, out_ref, *, h_tile):
    """mask=None: y_embed = h+1, x_embed = w+1; separable in (h, w).

    out_ref: (h_tile, W, F) lane-dense slab for rows [pid*h_tile, ...).
    Transcendentals: (h_tile + W) * F instead of h_tile * W * F.
    """
    _, W, F = out_ref.shape
    h0 = pl.program_id(0) * h_tile

    # y slab: (h_tile, 1, F) — zeroed on the x-half by sel_y.
    row = (lax.broadcasted_iota(jnp.int32, (h_tile, 1, F), 0)
           + (h0 + 1)).astype(jnp.float32)
    y_slab = jnp.sin(row * scale_y_ref[...] + phase_ref[...]) * sel_y_ref[...]

    # x slab: (1, W, F) — zeroed on the y-half by sel_x.
    col = (lax.broadcasted_iota(jnp.int32, (1, W, F), 1) + 1).astype(jnp.float32)
    x_slab = jnp.sin(col * scale_x_ref[...] + phase_ref[...]) * sel_x_ref[...]

    # Assemble: sublane/row broadcast + one add per output element, then a
    # single full-width lane-dense store.
    out_ref[...] = y_slab + x_slab


def _pe_mask_kernel(y_ref, x_ref, scale_y_ref, scale_x_ref, phase_ref, out_ref):
    """mask provided: purely elementwise (cumsums precomputed outside).

    y_ref / x_ref: (1, h_tile, W) f32; out_ref: (1, h_tile, W, F) f32.
    scale_y / scale_x are complementary (zero on the opposite half), so no
    lane compare/select and no materialized full-size `base` intermediate.
    """
    y = y_ref[0][:, :, None]   # (h_tile, W, 1)
    x = x_ref[0][:, :, None]
    out_ref[0] = jnp.sin(y * scale_y_ref[...] + x * scale_x_ref[...]
                         + phase_ref[...])


def _pick_h_tile_nomask(H, W, F, target_bytes=4 << 20):
    """~4 MiB output tiles (double-buffered -> ~8 MiB VMEM), >=2 grid steps."""
    row_bytes = W * F * 4
    h_tile = max(1, min(H, target_bytes // max(1, row_bytes)))
    if H > 1:
        h_tile = min(h_tile, (H + 1) // 2)   # give both TensorCores a step
    return h_tile


def _pick_h_tile_masked(H, W, F, target_bytes=2 << 20):
    """Few-MiB output blocks; h_tile must be a multiple of 8 or equal H
    (second-to-last dim of the (1, h_tile, W) input block)."""
    row_bytes = W * F * 4
    t = max(1, target_bytes // max(1, row_bytes))
    if t >= H or H <= 8:
        return H
    return max(8, (t // 8) * 8)


def grid_pe_sine(x, mask=None, *, num_pos_feats=64, temperature=10000,
                 normalize=False, scale=None):
    """Pallas implementation of GridPESine.forward.

    x:    (B, H, W, C) -- only its shape is used when mask is None.
    mask: optional bool (B, H, W); True marks padded positions.
    Returns: (B, H*W, 2*num_pos_feats) float32.
    """
    if scale is not None and normalize is False:
        raise ValueError('normalize should be True if scale is passed')
    if scale is None:
        scale = 2 * math.pi

    B, H, W = x.shape[0], x.shape[1], x.shape[2]
    P = num_pos_feats
    F = 2 * P

    c = _build_constants(P, temperature, normalize, scale, H, W)
    phase2 = jnp.asarray(c['phase2'])

    if mask is None:
        # Embedding is independent of the batch and of x's values: compute a
        # single (H, W, F) slab (tiled over H) and broadcast over B.  (The
        # slab is fully input-independent and could be cached per
        # (H, W, P, normalize, scale); under jit, consumers fuse the
        # broadcast instead of materializing B copies.)
        h_tile = _pick_h_tile_nomask(H, W, F)
        grid = (pl.cdiv(H, h_tile),)
        const_spec = pl.BlockSpec((1, 1, F), lambda i: (0, 0, 0))
        pos = pl.pallas_call(
            functools.partial(_pe_nomask_kernel, h_tile=h_tile),
            out_shape=jax.ShapeDtypeStruct((H, W, F), jnp.float32),
            grid_spec=pltpu.PrefetchScalarGridSpec(
                num_scalar_prefetch=0,
                grid=grid,
                in_specs=[const_spec, const_spec, const_spec,
                          const_spec, const_spec],
                out_specs=pl.BlockSpec((h_tile, W, F), lambda i: (i, 0, 0)),
            ),
            compiler_params=pltpu.CompilerParams(
                dimension_semantics=("parallel",)),
        )(jnp.asarray(c['scale_y_nm']), jnp.asarray(c['scale_x_nm']),
          phase2, jnp.asarray(c['sel_y']), jnp.asarray(c['sel_x']))
        pos = pos.reshape(H * W, F)
        return jnp.broadcast_to(pos[None], (B, H * W, F))

    # Masked path: the (tiny) data-dependent cumsums + normalization are done
    # in plain JAX on (B, H, W) so the Pallas kernel is purely elementwise and
    # tileable over (B, H).
    # TODO(synk): the H-prefix of the y-cumsum could instead be carried across
    # an "arbitrary" H grid axis in-kernel if the (B,H,W) precompute ever
    # matters; it is ~1/F of the output bytes so it does not today.
    not_mask = jnp.logical_not(mask).astype(jnp.float32)
    y_embed = jnp.cumsum(not_mask, axis=1)   # torch cumsum(dim=1)
    x_embed = jnp.cumsum(not_mask, axis=2)   # torch cumsum(dim=2)
    if normalize:
        eps = 1e-06
        y_embed = y_embed / (y_embed[:, -1:, :] + eps) * scale
        x_embed = x_embed / (x_embed[:, :, -1:] + eps) * scale

    h_tile = _pick_h_tile_masked(H, W, F)
    n_h = pl.cdiv(H, h_tile)
    emb_spec = pl.BlockSpec((1, h_tile, W), lambda b, h: (b, h, 0))
    const_spec = pl.BlockSpec((1, 1, F), lambda b, h: (0, 0, 0))
    pos = pl.pallas_call(
        _pe_mask_kernel,
        out_shape=jax.ShapeDtypeStruct((B, H, W, F), jnp.float32),
        grid_spec=pltpu.PrefetchScalarGridSpec(
            num_scalar_prefetch=0,
            grid=(B, n_h),
            in_specs=[emb_spec, emb_spec, const_spec, const_spec, const_spec],
            out_specs=pl.BlockSpec((1, h_tile, W, F),
                                   lambda b, h: (b, h, 0, 0)),
        ),
        compiler_params=pltpu.CompilerParams(
            dimension_semantics=("parallel", "parallel")),
    )(y_embed, x_embed, jnp.asarray(c['scale_y_m']),
      jnp.asarray(c['scale_x_m']), phase2)
    return pos.reshape(B, H * W, F)


def _reference(x, mask=None, *, num_pos_feats=64, temperature=10000,
               normalize=False, scale=None):
    """Pure-JAX port of the torch forward, for verification."""
    if scale is None:
        scale = 2 * math.pi
    B, H, W = x.shape[0], x.shape[1], x.shape[2]
    if mask is None:
        mask = jnp.zeros((B, H, W), dtype=bool)
    not_mask = (~mask).astype(jnp.float32)
    y_embed = jnp.cumsum(not_mask, axis=1)
    x_embed = jnp.cumsum(not_mask, axis=2)
    if normalize:
        eps = 1e-06
        y_embed = y_embed / (y_embed[:, -1:, :] + eps) * scale
        x_embed = x_embed / (x_embed[:, :, -1:] + eps) * scale
    dim_t = jnp.arange(num_pos_feats, dtype=jnp.float32)
    dim_t = temperature ** (2 * jnp.floor(dim_t / 2) / num_pos_feats)
    pos_x = x_embed[:, :, :, None] / dim_t
    pos_y = y_embed[:, :, :, None] / dim_t
    pos_x = jnp.stack((jnp.sin(pos_x[:, :, :, 0::2]),
                       jnp.cos(pos_x[:, :, :, 1::2])), axis=4).reshape(
                           B, H, W, num_pos_feats)
    pos_y = jnp.stack((jnp.sin(pos_y[:, :, :, 0::2]),
                       jnp.cos(pos_y[:, :, :, 1::2])), axis=4).reshape(
                           B, H, W, num_pos_feats)
    pos = jnp.concatenate((pos_y, pos_x), axis=3)
    return pos.reshape(B, H * W, 2 * num_pos_feats)


if __name__ == "__main__":
    key = jax.random.PRNGKey(0)
    B, H, W, C = 2, 8, 16, 4
    P = 64  # module default -> output feature dim 128

    x = jax.random.normal(key, (B, H, W, C), dtype=jnp.float32)

    # 1) mask=None, normalize=False (module defaults)
    pos = jax.block_until_ready(grid_pe_sine(x, num_pos_feats=P))
    ref = _reference(x, num_pos_feats=P)
    assert pos.shape == (B, H * W, 2 * P)
    assert jnp.allclose(pos, ref, atol=1e-4, rtol=1e-4)

    # 2) mask=None, normalize=True with explicit scale (folded-constant path)
    pos2 = jax.block_until_ready(
        grid_pe_sine(x, num_pos_feats=P, normalize=True, scale=3.0))
    ref2 = _reference(x, num_pos_feats=P, normalize=True, scale=3.0)
    assert jnp.allclose(pos2, ref2, atol=1e-4, rtol=1e-4)

    # 3) explicit padding mask, normalize=True (tiled elementwise path)
    mask = jnp.zeros((B, H, W), dtype=bool)
    mask = mask.at[0, 6:, :].set(True).at[0, :, 12:].set(True)
    mask = mask.at[1, 5:, :].set(True).at[1, :, 10:].set(True)
    pos3 = jax.block_until_ready(
        grid_pe_sine(x, mask, num_pos_feats=P, normalize=True))
    ref3 = _reference(x, mask, num_pos_feats=P, normalize=True)
    assert jnp.allclose(pos3, ref3, atol=1e-4, rtol=1e-4)

    print("KERNEL_OK")
</pallas_src>

<mosaic_0001>
module attributes {stable_mosaic.version = 11 : i64} {
  func.func @_pe_nomask_kernel(%arg0: i32, %arg1: memref<1x1x128xf32, #tpu.memory_space<vmem>>, %arg2: memref<1x1x128xf32, #tpu.memory_space<vmem>>, %arg3: memref<1x1x128xf32, #tpu.memory_space<vmem>>, %arg4: memref<1x1x128xf32, #tpu.memory_space<vmem>>, %arg5: memref<1x1x128xf32, #tpu.memory_space<vmem>>, %arg6: memref<4x16x128xf32, #tpu.memory_space<vmem>>) attributes {dimension_semantics = [#tpu.dimension_semantics<parallel>], iteration_bounds = array<i64: 2>, scalar_prefetch = 0 : i64, scratch_operands = 0 : i64, tpu.core_type = #tpu.core_type<tc>, window_params = [{pipeline_mode = #tpu.pipeline_mode<synchronous>, transform_indices = @transform_0, window_bounds = array<i64: 1, 1, 128>}, {pipeline_mode = #tpu.pipeline_mode<synchronous>, transform_indices = @transform_1, window_bounds = array<i64: 1, 1, 128>}, {pipeline_mode = #tpu.pipeline_mode<synchronous>, transform_indices = @transform_2, window_bounds = array<i64: 1, 1, 128>}, {pipeline_mode = #tpu.pipeline_mode<synchronous>, transform_indices = @transform_3, window_bounds = array<i64: 1, 1, 128>}, {pipeline_mode = #tpu.pipeline_mode<synchronous>, transform_indices = @transform_4, window_bounds = array<i64: 1, 1, 128>}, {transform_indices = @transform_5, window_bounds = array<i64: 4, 16, 128>}]} {
    %c4_i32 = arith.constant 4 : i32
    %0 = arith.muli %arg0, %c4_i32 : i32
    %1 = tpu.iota {dimensions = array<i32: 0>} : vector<4x1x128xi32>
    %c1_i32 = arith.constant 1 : i32
    %2 = arith.addi %0, %c1_i32 : i32
    %3 = vector.broadcast %2 : i32 to vector<4x1x128xi32>
    %4 = arith.addi %1, %3 : vector<4x1x128xi32>
    %5 = arith.sitofp %4 : vector<4x1x128xi32> to vector<4x1x128xf32>
    %c0 = arith.constant 0 : index
    %c0_0 = arith.constant 0 : index
    %c0_1 = arith.constant 0 : index
    %6 = vector.load %arg1[%c0, %c0_0, %c0_1] : memref<1x1x128xf32, #tpu.memory_space<vmem>>, vector<1x1x128xf32>
    %7 = vector.broadcast %6 : vector<1x1x128xf32> to vector<4x1x128xf32>
    %8 = arith.mulf %5, %7 : vector<4x1x128xf32>
    %c0_2 = arith.constant 0 : index
    %c0_3 = arith.constant 0 : index
    %c0_4 = arith.constant 0 : index
    %9 = vector.load %arg3[%c0_2, %c0_3, %c0_4] : memref<1x1x128xf32, #tpu.memory_space<vmem>>, vector<1x1x128xf32>
    %10 = vector.broadcast %9 : vector<1x1x128xf32> to vector<4x1x128xf32>
    %11 = arith.addf %8, %10 : vector<4x1x128xf32>
    %12 = math.sin %11 : vector<4x1x128xf32>
    %c0_5 = arith.constant 0 : index
    %c0_6 = arith.constant 0 : index
    %c0_7 = arith.constant 0 : index
    %13 = vector.load %arg4[%c0_5, %c0_6, %c0_7] : memref<1x1x128xf32, #tpu.memory_space<vmem>>, vector<1x1x128xf32>
    %14 = vector.broadcast %13 : vector<1x1x128xf32> to vector<4x1x128xf32>
    %15 = arith.mulf %12, %14 : vector<4x1x128xf32>
    %16 = tpu.iota {dimensions = array<i32: 1>} : vector<1x16x128xi32>
    %c1_i32_8 = arith.constant 1 : i32
    %17 = vector.broadcast %c1_i32_8 : i32 to vector<1x16x128xi32>
    %18 = arith.addi %16, %17 : vector<1x16x128xi32>
    %19 = arith.sitofp %18 : vector<1x16x128xi32> to vector<1x16x128xf32>
    %c0_9 = arith.constant 0 : index
    %c0_10 = arith.constant 0 : index
    %c0_11 = arith.constant 0 : index
    %20 = vector.load %arg2[%c0_9, %c0_10, %c0_11] : memref<1x1x128xf32, #tpu.memory_space<vmem>>, vector<1x1x128xf32>
    %21 = vector.broadcast %20 : vector<1x1x128xf32> to vector<1x16x128xf32>
    %22 = arith.mulf %19, %21 : vector<1x16x128xf32>
    %c0_12 = arith.constant 0 : index
    %c0_13 = arith.constant 0 : index
    %c0_14 = arith.constant 0 : index
    %23 = vector.load %arg3[%c0_12, %c0_13, %c0_14] : memref<1x1x128xf32, #tpu.memory_space<vmem>>, vector<1x1x128xf32>
    %24 = vector.broadcast %23 : vector<1x1x128xf32> to vector<1x16x128xf32>
    %25 = arith.addf %22, %24 : vector<1x16x128xf32>
    %26 = math.sin %25 : vector<1x16x128xf32>
    %c0_15 = arith.constant 0 : index
    %c0_16 = arith.constant 0 : index
    %c0_17 = arith.constant 0 : index
    %27 = vector.load %arg5[%c0_15, %c0_16, %c0_17] : memref<1x1x128xf32, #tpu.memory_space<vmem>>, vector<1x1x128xf32>
    %28 = vector.broadcast %27 : vector<1x1x128xf32> to vector<1x16x128xf32>
    %29 = arith.mulf %26, %28 : vector<1x16x128xf32>
    %30 = vector.broadcast %15 : vector<4x1x128xf32> to vector<4x16x128xf32>
    %31 = vector.broadcast %29 : vector<1x16x128xf32> to vector<4x16x128xf32>
    %32 = arith.addf %30, %31 : vector<4x16x128xf32>
    %c0_18 = arith.constant 0 : index
    %c0_19 = arith.constant 0 : index
    %c0_20 = arith.constant 0 : index
    %33 = vector.load %arg6[%c0_18, %c0_19, %c0_20] : memref<4x16x128xf32, #tpu.memory_space<vmem>>, vector<4x16x128xf32>
    tpu.vector_store %arg6[%c0_18, %c0_19, %c0_20], %32 {strides = array<i32>} : memref<4x16x128xf32, #tpu.memory_space<vmem>>, vector<4x16x128xf32>,
    return
  }
  func.func @transform_0(%arg0: i32) -> (i32, i32, i32) {
    %c0_i32 = arith.constant 0 : i32
    %c0_i32_0 = arith.constant 0 : i32
    %c0_i32_1 = arith.constant 0 : i32
    %c0_i32_2 = arith.constant 0 : i32
    return %c0_i32, %c0_i32_0, %c0_i32_1 : i32, i32, i32
  }
  func.func @transform_1(%arg0: i32) -> (i32, i32, i32) {
    %c0_i32 = arith.constant 0 : i32
    %c0_i32_0 = arith.constant 0 : i32
    %c0_i32_1 = arith.constant 0 : i32
    %c0_i32_2 = arith.constant 0 : i32
    return %c0_i32, %c0_i32_0, %c0_i32_1 : i32, i32, i32
  }
  func.func @transform_2(%arg0: i32) -> (i32, i32, i32) {
    %c0_i32 = arith.constant 0 : i32
    %c0_i32_0 = arith.constant 0 : i32
    %c0_i32_1 = arith.constant 0 : i32
    %c0_i32_2 = arith.constant 0 : i32
    return %c0_i32, %c0_i32_0, %c0_i32_1 : i32, i32, i32
  }
  func.func @transform_3(%arg0: i32) -> (i32, i32, i32) {
    %c0_i32 = arith.constant 0 : i32
    %c0_i32_0 = arith.constant 0 : i32
    %c0_i32_1 = arith.constant 0 : i32
    %c0_i32_2 = arith.constant 0 : i32
    return %c0_i32, %c0_i32_0, %c0_i32_1 : i32, i32, i32
  }
  func.func @transform_4(%arg0: i32) -> (i32, i32, i32) {
    %c0_i32 = arith.constant 0 : i32
    %c0_i32_0 = arith.constant 0 : i32
    %c0_i32_1 = arith.constant 0 : i32
    %c0_i32_2 = arith.constant 0 : i32
    return %c0_i32, %c0_i32_0, %c0_i32_1 : i32, i32, i32
  }
  func.func @transform_5(%arg0: i32) -> (i32, i32, i32) {
    %c0_i32 = arith.constant 0 : i32
    %c0_i32_0 = arith.constant 0 : i32
    %c0_i32_1 = arith.constant 0 : i32
    return %arg0, %c0_i32, %c0_i32_0 : i32, i32, i32
  }
}

</mosaic_0001>

<bundles_post_ra>
// kernel: tpu_custom_call.1
= control target key start
LH: loop header
LB: loop body
LE: loop exit
PB: predicated region body
PF: predicated region fallthrough
CT: control target
= control target key end

     0   :  { %10 = vsyncpa [#allocation3], 0  ;;  %s2537_s0 = inlined_call_operand.hbm [shape: f32[1,1,128], index: 0, kind: input, shape index: {}]   ;;  %s2538_s1 = inlined_call_operand.hbm [shape: f32[1,1,128], index: 1, kind: input, shape index: {}]   ;;  %s2539_s2 = inlined_call_operand.vmem [shape: f32[1,1,128], index: 2, kind: input, shape index: {}]   ;;  %s2540_s3 = inlined_call_operand.vmem [shape: f32[1,1,128], index: 3, kind: input, shape index: {}]   ;;  %s2541_s4 = inlined_call_operand.vmem [shape: f32[1,1,128], index: 4, kind: input, shape index: {}]   ;;  %s2542_s5 = inlined_call_operand.hbm [shape: f32[8,16,128], index: 5, kind: output, shape index: {}]  }
   0x1   :  { %11 = vsyncpa [#allocation6], 0 }
   0x2   :  { %12 = vsyncpa [#allocation4], 0 }
   0x3   :  { %14 = vsyncpa [#allocation4 + $0x1], 0  ;;  %s1610_s18 = smov 0   ;;  %s1612_s19 = smov 0  }
   0x4   :  { %s1614_s20 = smov 0   ;;  %s1616_s21 = smov 0  }
   0x5 LB: > { %s1631_s22 = sadd.s32 4294967295, %s1567_s21   ;;  %s1330_s23 = sadd.s32 4294967294, %s1567_s21   ;;  %s1567_s21 = sphi %s1616_s21, %s2563_s21   ;;  %s1563_s20 = sphi %s1614_s20, %s2562_s20   ;;  %s1559_s19 = sphi %s1612_s19, %s2561_s19   ;;  %s1555_s18 = sphi %s1610_s18, %s2560_s18  }
   0x6   : > { %s1635_s24 = sadd.s32 1, %s1567_s21   ;;  %s132_s25 = sadd.s32 1, %s1563_s20 }
   0x7   : > { %s129_s26 = ssub.s32 %s1567_s21, %s1635_s24  ;;  %p142_p0 = scmp.ne.s32.totalorder %s1563_s20, %s1559_s19 }
   0x8   : > { %p130_p1 = scmp.eq.s32.totalorder %s129_s26, 0  ;;  %p143_p2 = scmp.eq.s32.totalorder %s1631_s22, 1 }
   0x9   : > { %p148_p3 = scmp.ne.s32.totalorder %s1559_s19, %s1555_s18  ;;  %p149_p4 = scmp.eq.s32.totalorder %s1330_s23, 1 }
   0xa   : > { %s1646_s27 = scalar_select %p130_p1, %s1563_s20, %s132_s25  }
   0xb   : > { %p1648_p5 = por %p143_p2, %p142_p0  ;;  %p1652_p6 = por %p149_p4, %p148_p3 }
   0xc   : > { %p1331_p7 = scmp.ge.s32.totalorder %s1567_s21, 1  ;;  %p156_p8 = scmp.lt.s32.totalorder %s1567_s21, 3 }
   0xd   : > { %p1386_p9 = scmp.eq.s32.totalorder %s1631_s22, 0  ;;  %s168_s8 = sshll.u32 %s2537_s0, 4  ;;  %s169_s8 = int_to_ptr.hbm [resolvable:$true] %s168_s8 }
   0xe   : > { %p1659_p10 = pnand %p1331_p7, %p156_p8  ;;  %s1569_s9 = smov [#allocation2]  }
   0xf   : > { %s170_s10 = sshll.u32 %s1569_s9, 4  ;;  %s180_s13 = sshll.u32 %s2538_s1, 4  ;;  %s171_s10 = int_to_ptr.vmem [resolvable:$true] %s170_s10  ;;  %s181_s13 = int_to_ptr.hbm [resolvable:$true] %s180_s13 }
  0x10   : > { %p1375_p11 = pneg %p1659_p10  ;;  %s1570_s14 = smov [#allocation5]  }
  0x11   : > { %s182_s15 = sshll.u32 %s1570_s14, 4  ;;  %204 = sbr.rel (%p1659_p10) target bundleno = 302 (0x12e), region = 40  ;;  %s183_s15 = int_to_ptr.vmem [resolvable:$true] %s182_s15 }
  0x12   : > { %p1376_p12 = pnand %p1386_p9, %p1375_p11 }
  0x14   : > { %1378 = dma.hbm_to_vmem [thread:$0]  (!%p1376_p12), %s169_s8, 16, %s171_s10, [#allocation3]  }
  0x15   : > { %1381 = dma.hbm_to_vmem [thread:$0]  (!%p1376_p12), %s181_s13, 16, %s183_s15, [#allocation6]  }
  0x16   : > { %1542 = dma.done.wait (%p1386_p9), [#allocation3], 16  }
  0x17   : > { %1544 = vsyncadd (%p1386_p9), [#allocation3], 4294967280 }
  0x18   : > { %1546 = dma.done.wait (%p1386_p9), [#allocation6], 16  }
  0x19   : > { %1548 = vsyncadd (%p1386_p9), [#allocation6], 4294967280  ;;  %s1338_s16 = sshll.u32 %s1631_s22, 2  ;;  %v1689_v6 = vld [vmem:[#allocation2] sm:$0x1]  ;;  %s230_s8 = sand.u32 1, %s1559_s19  }
  0x1a   : > { %s235_s17 = sadd.s32 1, %s1338_s16  ;;  %v1694_v7 = vld [vmem:[%s2539_s2] sm:$0x1]  ;;  %v1571_v38 = vmov 683565275   ;;  %s1337_s9 = sshll.u32 %s230_s8, 6 }
  0x1b   : > { %v1684_v0 = vstv %s235_s17  ;;  %v1572_v40 = vmov 2475754826   ;;  %v1573_v42 = vmov 2131351028   ;;  %v1574_v44 = vmov 2102212464  }
  0x1c   : > { %v237_v1 = vadd.s32 1, %v1684_v0  ;;  %v238_v2 = vadd.s32 2, %v1684_v0  ;;  %v240_v3 = vcvt.s32.f32 %v1684_v0  ;;  %v1575_v46 = vmov 920167782   ;;  %s2486_s12 = scalar_lea.vmem [#allocation7], %s1337_s9  ;;  %s1364_s13 = sshll.u32 %s1631_s22, 6 }
  0x1d   : > { %v1576_v55 = vmov 1326507024   ;;  %s1254_s16 = scalar_lea.hbm %s2542_s5, %s1364_s13  ;;  %s1255_s17 = sshll.u32 %s2486_s12, 4  ;;  %s1256_s17 = int_to_ptr.vmem [resolvable:$true] %s1255_s17 }
  0x1e   : > { %v241_v4 = vcvt.s32.f32 %v237_v1  ;;  %v242_v5 = vcvt.s32.f32 %v238_v2  ;;  %v245_v8 = vmul.f32 %v1689_v6, %v240_v3  ;;  %s1257_s23 = sshll.u32 %s1254_s16, 4  ;;  %s1242_s22 = scalar_lea.sflag [#allocation4], %s230_s8  ;;  %s1258_s23 = int_to_ptr.hbm [resolvable:$true] %s1257_s23 }
  0x1f   : > { %s1511_s25 = sshra.s32 %s1258_s23, 4  ;;  %s1517_s7 = scalar_lea.hbm %s2542_s5, 128  ;;  %s1512_s25 = int_to_ptr.hbm [resolvable:$true] %s1511_s25 }
  0x20   : > { %v246_v9 = vmul.f32 %v1689_v6, %v241_v4  ;;  %v247_v10 = vmul.f32 %v1689_v6, %v242_v5  ;;  %v1700_v11 = vadd.f32 %v1694_v7, %v245_v8  ;;  %s1513_s26 = scalar_lea.hbm %s1512_s25, 64  ;;  %p1518_p2 = scmp.lt.s32.totalorder %s1512_s25, %s2542_s5 }
  0x21   : > { %p1514_p13 = scmp.ne.s32.totalorder %s1512_s25, %s1513_s26  ;;  %p1519_p3 = scmp.lt.s32.totalorder %s1517_s7, %s1513_s26 }
  0x22   : > { %v1703_v12 = vadd.f32 %v1694_v7, %v246_v9  ;;  %v1706_v13 = vadd.f32 %v1694_v7, %v247_v10  ;;  %v254_v14 = vand.u32 2147483647, %v1700_v11  ;;  %v257_v15 = vand.u32 2139095040, %v1700_v11 }
  0x23   : > { %p1515_p0 = pnand %p1514_p13, %p1648_p5  ;;  %p1520_p4 = por %p1519_p3, %p1518_p2 }
  0x24   : > { %v409_v16 = vand.u32 2147483647, %v1703_v12  ;;  %v412_v17 = vand.u32 2139095040, %v1703_v12  ;;  %v258_v18 = vshrl.u32 %v257_v15, 23  ;;  %v261_v19 = vand.u32 8388607, %v254_v14 }
  0x25   : > { %v567_v21 = vand.u32 2139095040, %v1706_v13  ;;  %p1516_p1 = pneg %p1515_p0 }
  0x26   : > { %v413_v20 = vshrl.u32 %v412_v17, 23  ;;  %v1339_v22 = vadd.s32 4294967169, %v258_v18  ;;  %v262_v23 = vor.u32 8388608, %v261_v19  ;;  %v416_v25 = vand.u32 8388607, %v409_v16 }
  0x27   : > { %v568_v28 = vshrl.u32 %v567_v21, 23  ;;  %p1521_p7 = pnand %p1520_p4, %p1516_p1 }
  0x28   : > { %v1342_v24 = vadd.s32 4294967169, %v413_v20  ;;  %v264_v26 = vadd.s32 1, %v1339_v22  ;;  %v1717_v30 = vshll.u32 %v262_v23, 8  ;;  %v417_v31 = vor.u32 8388608, %v416_v25 }
  0x29   : > { %v1723_v36 = vadd.s32 4294967169, %v568_v28 }
  0x2a   : > { %v419_v27 = vadd.s32 1, %v1342_v24  ;;  %vm265_vm0 = vcmp.gt.s32.totalorder %v264_v26, 0  ;;  %v303_v48 = vand.u32 65535, %v1717_v30  ;;  %v1731_v49 = vshll.u32 %v417_v31, 8 }
  0x2b   : > { %v266_v29 = vsel %vm265_vm0, %v264_v26, 0  ;;  %v304_v53 = vshrl.u32 %v1717_v30, 16 }
  0x2c   : > { %vm420_vm1 = vcmp.gt.s32.totalorder %v419_v27, 0  ;;  %v268_v32 = vand.u32 31, %v266_v29  ;;  %v1719_v34 = vshrl.u32 %v266_v29, 5 }
  0x2d   : > { %v421_v33 = vsel %vm420_vm1, %v419_v27, 0 }
  0x2e   : > { %v1721_v35 = vand.u32 31, %v421_v33  ;;  %v269_v37 = vsub.s32 32, %v268_v32  ;;  %v271_v39 = vshll.u32 %v1571_v38, %v268_v32  ;;  %v274_v41 = vshll.u32 %v1572_v40, %v268_v32 }
  0x2f   : > { %v277_v43 = vshll.u32 %v1573_v42, %v268_v32  ;;  %v280_v45 = vshll.u32 %v1574_v44, %v268_v32  ;;  %v283_v47 = vshll.u32 %v1575_v46, %v268_v32  ;;  %vm286_vm2 = vcmp.lt.s32.totalorder %v1719_v34, 1 }
  0x30   : > { %v272_v50 = vshrl.u32 %v1572_v40, %v269_v37  ;;  %v275_v51 = vshrl.u32 %v1573_v42, %v269_v37  ;;  %v278_v52 = vshrl.u32 %v1574_v44, %v269_v37  ;;  %v281_v54 = vshrl.u32 %v1575_v46, %v269_v37 }
  0x31   : > { %v284_v56 = vshrl.u32 %v1576_v55, %v269_v37  ;;  %vm289_vm3 = vcmp.lt.s32.totalorder %v1719_v34, 4  ;;  %v1742_v60 = vsub.s32 32, %v1721_v35  ;;  %v270_v61 = vshrl.u32 %v1571_v38, %v269_v37 }
  0x32   : > { %v273_v57 = vor.u32 %v272_v50, %v271_v39  ;;  %v276_v58 = vor.u32 %v275_v51, %v274_v41  ;;  %v279_v59 = vor.u32 %v278_v52, %v277_v43  ;;  %v282_v62 = vor.u32 %v281_v54, %v280_v45 }
  0x33   : > { %v285_v63 = vor.u32 %v284_v56, %v283_v47  ;;  %vm288_vm4 = vcmp.lt.s32.totalorder %v1719_v34, 3  ;;  %vm287_vm5 = vcmp.lt.s32.totalorder %v1719_v34, 2  ;;  %v1751_v3 = vshrl.u32 %v421_v33, 5 }
  0x34   : > { %v294_v1 = vsel %vm286_vm2, %v273_v57, %v276_v58  ;;  %v298_v2 = vsel %vm286_vm2, %v276_v58, %v279_v59  ;;  %v295_v4 = vsel %vm289_vm3, %v282_v62, 920167782  ;;  %v426_v8 = vshll.u32 %v1571_v38, %v1721_v35 }
  0x35   : > { %v299_v5 = vsel %vm289_vm3, %v285_v63, 1326507024  ;;  %v429_v9 = vshll.u32 %v1572_v40, %v1721_v35  ;;  %v291_v10 = vsel %vm289_vm3, %v279_v59, 2102212464  ;;  %v296_v15 = vsel %vm288_vm4, %v279_v59, %v295_v4 }
  0x36   : > { %v300_v17 = vsel %vm288_vm4, %v282_v62, %v299_v5  ;;  %v427_v18 = vshrl.u32 %v1572_v40, %v1742_v60  ;;  %v290_v19 = vsel %vm286_vm2, %v270_v61, %v273_v57  ;;  %v297_v20 = vsel %vm287_vm5, %v294_v1, %v296_v15 }
  0x37   : > { %v301_v21 = vsel %vm287_vm5, %v298_v2, %v300_v17  ;;  %v430_v22 = vshrl.u32 %v1573_v42, %v1742_v60  ;;  %v327_v25 = vand.u32 65535, %v297_v20  ;;  %v328_v26 = vshrl.u32 %v297_v20, 16 }
  0x38   : > { %v305_v23 = vand.u32 65535, %v301_v21  ;;  %v306_v24 = vshrl.u32 %v301_v21, 16  ;;  %v292_v27 = vsel %vm288_vm4, %v276_v58, %v291_v10  ;;  %v1779_v28 = vor.u32 %v427_v18, %v426_v8 }
  0x39   : > { %v1781_v29 = vor.u32 %v430_v22, %v429_v9  ;;  %v432_v31 = vshll.u32 %v1573_v42, %v1721_v35  ;;  %v433_v39 = vshrl.u32 %v1574_v44, %v1742_v60  ;;  %v329_v43 = vmul.u32 %v327_v25, %v303_v48 }
  0x3a   : > { %v307_v32 = vmul.u32 %v305_v23, %v303_v48  ;;  %v308_v33 = vmul.u32 %v306_v24, %v303_v48  ;;  %v309_v37 = vmul.u32 %v305_v23, %v304_v53  ;;  %v310_v41 = vmul.u32 %v306_v24, %v304_v53 }
  0x3b   : > { %v330_v45 = vmul.u32 %v328_v26, %v303_v48  ;;  %v331_v47 = vmul.u32 %v327_v25, %v304_v53  ;;  %v332_v54 = vmul.u32 %v328_v26, %v304_v53  ;;  %v435_v63 = vshll.u32 %v1574_v44, %v1721_v35 }
  0x3c   : > { %v311_v50 = vshll.u32 %v308_v33, 16  ;;  %v312_v51 = vshrl.u32 %v308_v33, 16  ;;  %v313_v52 = vshll.u32 %v309_v37, 16  ;;  %v314_v56 = vshrl.u32 %v309_v37, 16 }
  0x3d   : > { %v333_v57 = vshll.u32 %v330_v45, 16  ;;  %v334_v58 = vshrl.u32 %v330_v45, 16  ;;  %v335_v59 = vshll.u32 %v331_v47, 16  ;;  %v336_v62 = vshrl.u32 %v331_v47, 16 }
  0x3e   : > { %vm315_vm6 = vc.u32 %v307_v32, %v311_v50  ;;  %v317_v61 = vadd.s32 %v311_v50, %v307_v32  ;;  %v1577_v1 = vmov 0   ;;  %v436_v4 = vshrl.u32 %v1575_v46, %v1742_v60 }
  0x3f   : > { %v316_v2 = vsel %vm315_vm6, 1, %v1577_v1  ;;  %vm337_vm7 = vc.u32 %v329_v43, %v333_v57  ;;  %v339_v48 = vadd.s32 %v333_v57, %v329_v43  ;;  %v438_v8 = vshll.u32 %v1575_v46, %v1721_v35 }
  0x40   : > { %v318_v5 = vadd.s32 %v316_v2, %v310_v41  ;;  %vm319_vm8 = vc.u32 %v317_v61, %v313_v52  ;;  %v338_v53 = vsel %vm337_vm7, 1, %v1577_v1  ;;  %v1796_v15 = vor.u32 %v433_v39, %v432_v31 }
  0x41   : > { %v320_v9 = vsel %vm319_vm8, 1, %v1577_v1  ;;  %v340_v10 = vadd.s32 %v338_v53, %v332_v54  ;;  %vm341_vm9 = vc.u32 %v339_v48, %v335_v59  ;;  %v437_v20 = vor.u32 %v436_v4, %v435_v63 }
  0x42   : > { %v322_v17 = vadd.s32 %v320_v9, %v318_v5  ;;  %v342_v18 = vsel %vm341_vm9, 1, %v1577_v1  ;;  %v439_v21 = vshrl.u32 %v1576_v55, %v1742_v60  ;;  %v1801_v22 = vadd.s32 %v339_v48, %v335_v59 }
  0x43   : > { %v344_v23 = vadd.s32 %v342_v18, %v340_v10  ;;  %vm441_vm10 = vcmp.lt.s32.totalorder %v1751_v3, 1  ;;  %vm443_vm11 = vcmp.lt.s32.totalorder %v1751_v3, 3  ;;  %vm442_vm12 = vcmp.lt.s32.totalorder %v1751_v3, 2 }
  0x44   : > { %v323_v35 = vadd.s32 %v322_v17, %v312_v51  ;;  %v440_v24 = vor.u32 %v439_v21, %v438_v8  ;;  %vm444_vm13 = vcmp.lt.s32.totalorder %v1751_v3, 4  ;;  %v293_v25 = vsel %vm287_vm5, %v290_v19, %v292_v27 }
  0x45   : > { %v345_v26 = vadd.s32 %v344_v23, %v334_v58  ;;  %v449_v31 = vsel %vm441_vm10, %v1779_v28, %v1781_v29  ;;  %v450_v32 = vsel %vm444_vm13, %v437_v20, 920167782  ;;  %v453_v34 = vsel %vm441_vm10, %v1781_v29, %v1796_v15 }
  0x46   : > { %v1815_v33 = vadd.s32 %v323_v35, %v314_v56  ;;  %v451_v37 = vsel %vm443_vm11, %v1796_v15, %v450_v32  ;;  %v458_v19 = vand.u32 65535, %v1731_v49  ;;  %v454_v41 = vsel %vm444_vm13, %v440_v24, 1326507024 }
  0x47   : > { %v346_v27 = vadd.s32 %v345_v26, %v336_v62  ;;  %v452_v39 = vsel %vm442_vm12, %v449_v31, %v451_v37  ;;  %v459_v43 = vshrl.u32 %v1731_v49, 16  ;;  %v347_v45 = vmul.u32 %v1717_v30, %v293_v25 }
  0x48   : > { %vm349_vm14 = vc.u32 %v1815_v33, %v1801_v22  ;;  %v455_v47 = vsel %vm443_vm11, %v437_v20, %v454_v41  ;;  %v482_v50 = vand.u32 65535, %v452_v39  ;;  %v483_v54 = vshrl.u32 %v452_v39, 16 }
  0x49   : > { %v350_v51 = vadd.s32 1, %v346_v27  ;;  %v456_v52 = vsel %vm442_vm12, %v453_v34, %v455_v47  ;;  %v574_v62 = vadd.s32 1, %v1723_v36  ;;  %v446_v47 = vsel %vm444_vm13, %v1796_v15, 2102212464 }
  0x4a   : > { %v460_v56 = vand.u32 65535, %v456_v52  ;;  %v461_v57 = vshrl.u32 %v456_v52, 16  ;;  %v485_v59 = vmul.u32 %v483_v54, %v458_v19  ;;  %v486_v61 = vmul.u32 %v482_v50, %v459_v43 }
  0x4b   : > { %v351_v58 = vsel %vm349_vm14, %v350_v51, %v346_v27  ;;  %v484_v48 = vmul.u32 %v482_v50, %v458_v19  ;;  %v487_v17 = vmul.u32 %v483_v54, %v459_v43  ;;  %vm575_vm15 = vcmp.gt.s32.totalorder %v574_v62, 0 }
  0x4c   : > { %v352_v30 = vadd.s32 %v351_v58, %v347_v45  ;;  %v462_v63 = vmul.u32 %v460_v56, %v458_v19  ;;  %v463_v2 = vmul.u32 %v461_v57, %v458_v19  ;;  %v464_v4 = vmul.u32 %v460_v56, %v459_v43 }
  0x4d   : > { %v488_v5 = vshll.u32 %v485_v59, 16  ;;  %v465_v8 = vmul.u32 %v461_v57, %v459_v43  ;;  %v490_v18 = vshll.u32 %v486_v61, 16  ;;  %v576_v25 = vsel %vm575_vm15, %v574_v62, 0 }
  0x4e   : > { %v353_v53 = vadd.s32 536870912, %v352_v30  ;;  %v466_v9 = vshll.u32 %v463_v2, 16  ;;  %v468_v10 = vshll.u32 %v464_v4, 16  ;;  %v489_v37 = vshrl.u32 %v485_v59, 16 }
  0x4f   : > { %vm492_vm1 = vc.u32 %v484_v48, %v488_v5  ;;  %v494_v35 = vadd.s32 %v488_v5, %v484_v48  ;;  %v467_v19 = vshrl.u32 %v463_v2, 16  ;;  %v578_v41 = vand.u32 31, %v576_v25 }
  0x50   : > { %v1838_v20 = vshrl.u32 %v353_v53, 30  ;;  %vm470_vm0 = vc.u32 %v462_v63, %v466_v9  ;;  %v472_v21 = vadd.s32 %v466_v9, %v462_v63  ;;  %v493_v23 = vsel %vm492_vm1, 1, %v1577_v1 }
  0x51   : > { %v471_v36 = vsel %vm470_vm0, 1, %v1577_v1  ;;  %v495_v31 = vadd.s32 %v493_v23, %v487_v17  ;;  %vm496_vm3 = vc.u32 %v494_v35, %v490_v18  ;;  %v425_v43 = vshrl.u32 %v1571_v38, %v1742_v60 }
  0x52   : > { %v473_v24 = vadd.s32 %v471_v36, %v465_v8  ;;  %vm474_vm2 = vc.u32 %v472_v21, %v468_v10  ;;  %v355_v32 = vshll.u32 %v1838_v20, 30  ;;  %v497_v34 = vsel %vm496_vm3, 1, %v1577_v1 }
  0x53   : > { %v475_v26 = vsel %vm474_vm2, 1, %v1577_v1  ;;  %v499_v39 = vadd.s32 %v497_v34, %v495_v31  ;;  %v491_v50 = vshrl.u32 %v486_v61, 16  ;;  %v469_v52 = vshrl.u32 %v464_v4, 16 }
  0x54   : > { %v477_v27 = vadd.s32 %v475_v26, %v473_v24  ;;  %v1847_v45 = vsub.s32 %v352_v30, %v355_v32  ;;  %v1852_v56 = vsub.s32 32, %v578_v41  ;;  %v564_v57 = vand.u32 2147483647, %v1706_v13 }
  0x55   : > { %v500_v51 = vadd.s32 %v499_v39, %v489_v37  ;;  %v445_v58 = vsel %vm441_vm10, %v425_v43, %v1779_v28  ;;  %v447_v60 = vsel %vm443_vm11, %v1781_v29, %v446_v47  ;;  %v1861_v59 = vadd.s32 %v494_v35, %v490_v18 }
  0x56   : > { %v478_v54 = vadd.s32 %v477_v27, %v467_v19  ;;  %v1863_v62 = vshrl.u32 %v576_v25, 5  ;;  %vm357_vm4 = vcmp.lt.s32.totalorder %v1847_v45, 0  ;;  %v358_v15 = vsub.s32 0, %v1847_v45 }
  0x57   : > { %v501_v61 = vadd.s32 %v500_v51, %v491_v50  ;;  %v584_v30 = vshll.u32 %v1572_v40, %v578_v41  ;;  %v585_v28 = vshrl.u32 %v1573_v42, %v1852_v56  ;;  %v590_v2 = vshll.u32 %v1574_v44, %v578_v41 }
  0x58   : > { %v1868_v63 = vadd.s32 %v478_v54, %v469_v52  ;;  %v591_v29 = vshrl.u32 %v1575_v46, %v1852_v56  ;;  %v587_v48 = vshll.u32 %v1573_v42, %v578_v41  ;;  %v588_v4 = vshrl.u32 %v1574_v44, %v1852_v56 }
  0x59   : > { %v593_v5 = vshll.u32 %v1575_v46, %v578_v41  ;;  %v594_v53 = vshrl.u32 %v1576_v55, %v1852_v56  ;;  %v448_v8 = vsel %vm442_vm12, %v445_v58, %v447_v60  ;;  %v571_v9 = vand.u32 8388607, %v564_v57 }
  0x5a   : > { %v359_v10 = vsel %vm357_vm4, %v358_v15, %v1847_v45  ;;  %v505_v17 = vadd.s32 1, %v501_v61  ;;  %v581_v18 = vshll.u32 %v1571_v38, %v578_v41  ;;  %v582_v21 = vshrl.u32 %v1572_v40, %v1852_v56 }
  0x5b   : > { %vm504_vm5 = vc.u32 %v1868_v63, %v1861_v59  ;;  %v592_v36 = vor.u32 %v591_v29, %v590_v2  ;;  %v1891_v23 = vor.u32 %v585_v28, %v584_v30  ;;  %v1893_v35 = vor.u32 %v588_v4, %v587_v48 }
  0x5c   : > { %v595_v3 = vor.u32 %v594_v53, %v593_v5  ;;  %vm599_vm6 = vcmp.lt.s32.totalorder %v1863_v62, 4  ;;  %v360_v24 = vclz %v359_v10  ;;  %v502_v25 = vmul.u32 %v1731_v49, %v448_v8 }
  0x5d   : > { %v572_v26 = vor.u32 8388608, %v571_v9  ;;  %vm596_vm7 = vcmp.lt.s32.totalorder %v1863_v62, 1  ;;  %v506_v31 = vsel %vm504_vm5, %v505_v17, %v501_v61  ;;  %v1898_v32 = vor.u32 %v582_v21, %v581_v18 }
  0x5e   : > { %vm598_vm8 = vcmp.lt.s32.totalorder %v1863_v62, 3  ;;  %vm597_vm9 = vcmp.lt.s32.totalorder %v1863_v62, 2  ;;  %v605_v37 = vsel %vm599_vm6, %v592_v36, 920167782  ;;  %v608_v34 = vsel %vm596_vm7, %v1891_v23, %v1893_v35 }
  0x5f   : > { %v609_v49 = vsel %vm599_vm6, %v595_v3, 1326507024  ;;  %v1340_v19 = vadd.s32 4294967294, %v360_v24  ;;  %v507_v27 = vadd.s32 %v506_v31, %v502_v25  ;;  %v1912_v41 = vshll.u32 %v572_v26, 8 }
  0x60   : > { %v610_v39 = vsel %vm598_vm8, %v592_v36, %v609_v49  ;;  %v604_v43 = vsel %vm596_vm7, %v1898_v32, %v1891_v23  ;;  %v606_v47 = vsel %vm598_vm8, %v1893_v35, %v605_v37  ;;  %v239_v30 = vadd.s32 3, %v1684_v0 }
  0x61   : > { %v611_v50 = vsel %vm597_vm9, %v608_v34, %v610_v39  ;;  %v613_v51 = vand.u32 65535, %v1912_v41  ;;  %v614_v52 = vshrl.u32 %v1912_v41, 16  ;;  %vm1341_vm10 = vcmp.lt.s32.totalorder %v1340_v19, 0 }
  0x62   : > { %v615_v54 = vand.u32 65535, %v611_v50  ;;  %v616_v58 = vshrl.u32 %v611_v50, 16  ;;  %v508_v60 = vadd.s32 536870912, %v507_v27  ;;  %v607_v15 = vsel %vm597_vm9, %v604_v43, %v606_v47 }
  0x63   : > { %v363_v29 = vsel %vm1341_vm10, 0, %v1340_v19  ;;  %v638_v5 = vshrl.u32 %v607_v15, 16  ;;  %v637_v9 = vand.u32 65535, %v607_v15  ;;  %v243_v10 = vcvt.s32.f32 %v239_v30 }
  0x64   : > { %v619_v61 = vmul.u32 %v615_v54, %v614_v52  ;;  %v617_v28 = vmul.u32 %v615_v54, %v613_v51  ;;  %v618_v2 = vmul.u32 %v616_v58, %v613_v51  ;;  %v1928_v53 = vshrl.u32 %v508_v60, 30 }
  0x65   : > { %v620_v8 = vmul.u32 %v616_v58, %v614_v52  ;;  %v368_v18 = vsub.s32 4294967266, %v363_v29  ;;  %v640_v36 = vmul.u32 %v638_v5, %v613_v51  ;;  %v641_v24 = vmul.u32 %v637_v9, %v614_v52 }
  0x66   : > { %v621_v48 = vshll.u32 %v618_v2, 16  ;;  %v623_v4 = vshll.u32 %v619_v61, 16  ;;  %v510_v0 = vshll.u32 %v1928_v53, 30  ;;  %v248_v25 = vmul.f32 %v1689_v6, %v243_v10 }
  0x67   : > { %v348_v26 = vadd.s32 %v1801_v22, %v1815_v33  ;;  %v364_v31 = vsub.s32 32, %v363_v29  ;;  %v639_v37 = vmul.u32 %v637_v9, %v613_v51  ;;  %v369_v34 = vadd.s32 127, %v368_v18 }
  0x68   : > { %vm625_vm11 = vc.u32 %v617_v28, %v621_v48  ;;  %v627_v17 = vadd.s32 %v621_v48, %v617_v28  ;;  %v622_v19 = vshrl.u32 %v618_v2, 16  ;;  %v642_v43 = vmul.u32 %v638_v5, %v614_v52 }
  0x69   : > { %v626_v21 = vsel %vm625_vm11, 1, %v1577_v1  ;;  %v643_v47 = vshll.u32 %v640_v36, 16  ;;  %v1936_v50 = vsub.s32 %v507_v27, %v510_v0  ;;  %v580_v54 = vshrl.u32 %v1571_v38, %v1852_v56 }
  0x6a   : > { %vm629_vm12 = vc.u32 %v627_v17, %v623_v4  ;;  %v628_v3 = vadd.s32 %v626_v21, %v620_v8  ;;  %v645_v58 = vshll.u32 %v641_v24, 16  ;;  %v1941_v6 = vadd.f32 %v1694_v7, %v248_v25 }
  0x6b   : > { %v630_v49 = vsel %vm629_vm12, 1, %v1577_v1  ;;  %v365_v22 = vshll.u32 %v1847_v45, %v363_v29  ;;  %v366_v33 = vshrl.u32 %v348_v26, %v364_v31  ;;  %vm647_vm13 = vc.u32 %v639_v37, %v643_v47 }
  0x6c   : > { %v632_v39 = vadd.s32 %v630_v49, %v628_v3  ;;  %v370_v51 = vshll.u32 %v369_v34, 23  ;;  %v601_v60 = vsel %vm599_vm6, %v1893_v35, 2102212464  ;;  %v648_v52 = vsel %vm647_vm13, 1, %v1577_v1 }
  0x6d   : > { %v649_v27 = vadd.s32 %v643_v47, %v639_v37  ;;  %v624_v15 = vshrl.u32 %v619_v61, 16  ;;  %v650_v28 = vadd.s32 %v648_v52, %v642_v43  ;;  %v513_v56 = vsub.s32 0, %v1936_v50 }
  0x6e   : > { %v633_v30 = vadd.s32 %v632_v39, %v622_v19  ;;  %v600_v7 = vsel %vm596_vm7, %v580_v54, %v1898_v32  ;;  %v644_v45 = vshrl.u32 %v640_v36, 16  ;;  %vm512_vm15 = vcmp.lt.s32.totalorder %v1936_v50, 0 }
  0x6f   : > { %vm651_vm14 = vc.u32 %v649_v27, %v645_v58  ;;  %v602_v35 = vsel %vm598_vm8, %v1891_v23, %v601_v60  ;;  %v722_v61 = vand.u32 2139095040, %v1941_v6  ;;  %v367_v29 = vor.u32 %v366_v33, %v365_v22 }
  0x70   : > { %v652_v2 = vsel %vm651_vm14, 1, %v1577_v1  ;;  %v371_v48 = vor.u32 4788187, %v370_v51  ;;  %v646_v4 = vshrl.u32 %v641_v24, 16  ;;  %v1958_v8 = vadd.s32 %v633_v30, %v624_v15 }
  0x71   : > { %v654_v5 = vadd.s32 %v652_v2, %v650_v28  ;;  %v1960_v9 = vadd.s32 %v649_v27, %v645_v58  ;;  %v723_v32 = vshrl.u32 %v722_v61, 23  ;;  %v514_v10 = vsel %vm512_vm15, %v513_v56, %v1936_v50 }
  0x72   : > { %v603_v17 = vsel %vm597_vm9, %v600_v7, %v602_v35  ;;  %v372_v21 = vand.u32 2147483647, %v371_v48  ;;  %v374_v36 = vcvt.s32.f32 %v367_v29  ;;  %v515_v3 = vclz %v514_v10 }
  0x73   : > { %v655_v18 = vadd.s32 %v654_v5, %v644_v45  ;;  %v1348_v23 = vadd.s32 4294967169, %v723_v32  ;;  %v657_v25 = vmul.u32 %v1912_v41, %v603_v17  ;;  %vm659_vm0 = vc.u32 %v1958_v8, %v1960_v9 }
  0x74   : > { %v375_v31 = vmul.f32 %v374_v36, %v372_v21  ;;  %v1343_v49 = vadd.s32 4294967294, %v515_v3  ;;  %v719_v19 = vand.u32 2147483647, %v1941_v6  ;;  %vm256_vm2 = vcmp.lt.s32.totalorder %v1700_v11, 0 }
  0x75   : > { %v656_v0 = vadd.s32 %v655_v18, %v646_v4  ;;  %v729_v24 = vadd.s32 1, %v1348_v23  ;;  %vm1990_vm4 = vcmp.le.f32.partialorder %v254_v14, 0.7853982  ;;  %v378_v5 = vsub.s32 4, %v1838_v20 }
  0x76   : > { %v376_v47 = vxor.u32 2147483648, %v375_v31  ;;  %vm1344_vm3 = vcmp.lt.s32.totalorder %v1343_v49, 0  ;;  %v726_v58 = vand.u32 8388607, %v719_v19  ;;  %v879_v21 = vlaneseq }
  0x77   : > { %v660_v26 = vadd.s32 1, %v656_v0  ;;  %vm730_vm1 = vcmp.gt.s32.totalorder %v729_v24, 0  ;;  %v518_v45 = vsel %vm1344_vm3, 0, %v1343_v49  ;;  %vm411_vm9 = vcmp.lt.s32.totalorder %v1703_v12, 0 }
  0x78   : > { %v731_v34 = vsel %vm730_vm1, %v729_v24, 0  ;;  %v377_v56 = vsel %vm256_vm2, %v376_v47, %v375_v31  ;;  %v727_v2 = vor.u32 8388608, %v726_v58  ;;  %v523_v17 = vsub.s32 4294967266, %v518_v45 }
  0x79   : > { %v661_v37 = vsel %vm659_vm0, %v660_v26, %v656_v0  ;;  %v733_v39 = vand.u32 31, %v731_v34  ;;  %v1983_v27 = vshrl.u32 %v731_v34, 5  ;;  %v2013_v10 = vsel %vm1990_vm4, %v1700_v11, %v377_v56 }
  0x7a   : > { %v662_v62 = vadd.s32 %v661_v37, %v657_v25  ;;  %v2019_v23 = vshll.u32 %v727_v2, 8  ;;  %v2031_v25 = vsel %vm256_vm2, %v378_v5, %v1838_v20  ;;  %v2039_v26 = vmul.f32 %v2013_v10, %v2013_v10 }
  0x7b   : > { %v1970_v54 = vsub.s32 32, %v733_v39  ;;  %v736_v22 = vshll.u32 %v1571_v38, %v733_v39  ;;  %v739_v51 = vshll.u32 %v1572_v40, %v733_v39  ;;  %v745_v52 = vshll.u32 %v1574_v44, %v733_v39 }
  0x7c   : > { %v663_v43 = vadd.s32 536870912, %v662_v62  ;;  %v742_v15 = vshll.u32 %v1573_v42, %v733_v39  ;;  %v748_v14 = vshll.u32 %v1575_v46, %v733_v39  ;;  %vm751_vm5 = vcmp.lt.s32.totalorder %v1983_v27, 1 }
  0x7d   : > { %v737_v33 = vshrl.u32 %v1572_v40, %v1970_v54  ;;  %v740_v60 = vshrl.u32 %v1573_v42, %v1970_v54  ;;  %v743_v30 = vshrl.u32 %v1574_v44, %v1970_v54  ;;  %v746_v7 = vshrl.u32 %v1575_v46, %v1970_v54 }
  0x7e   : > { %v1972_v41 = vshrl.u32 %v663_v43, 30  ;;  %v749_v4 = vshrl.u32 %v1576_v55, %v1970_v54  ;;  %vm753_vm6 = vcmp.lt.s32.totalorder %v1983_v27, 3  ;;  %vm754_vm7 = vcmp.lt.s32.totalorder %v1983_v27, 4 }
  0x7f   : > { %v1999_v61 = vor.u32 %v737_v33, %v736_v22  ;;  %v2001_v29 = vor.u32 %v740_v60, %v739_v51  ;;  %v747_v48 = vor.u32 %v746_v7, %v745_v52  ;;  %v2007_v32 = vor.u32 %v743_v30, %v742_v15 }
  0x80   : > { %v665_v35 = vshll.u32 %v1972_v41, 30  ;;  %v750_v36 = vor.u32 %v749_v4, %v748_v14  ;;  %vm752_vm8 = vcmp.lt.s32.totalorder %v1983_v27, 2  ;;  %v503_v31 = vadd.s32 %v1861_v59, %v1868_v63 }
  0x81   : > { %v759_v0 = vsel %vm751_vm5, %v1999_v61, %v2001_v29  ;;  %v760_v3 = vsel %vm754_vm7, %v747_v48, 920167782  ;;  %v519_v37 = vsub.s32 32, %v518_v45  ;;  %v533_v34 = vsub.s32 4, %v1928_v53 }
  0x82   : > { %v2017_v18 = vsub.s32 %v662_v62, %v665_v35  ;;  %v761_v24 = vsel %vm753_vm6, %v2007_v32, %v760_v3  ;;  %v524_v49 = vadd.s32 127, %v523_v17  ;;  %v763_v62 = vsel %vm751_vm5, %v2001_v29, %v2007_v32 }
  0x83   : > { %v762_v20 = vsel %vm752_vm8, %v759_v0, %v761_v24  ;;  %v880_v39 = vshrl.u32 %v879_v21, 7  ;;  %v764_v47 = vsel %vm754_vm7, %v750_v36, 1326507024  ;;  %v768_v59 = vand.u32 65535, %v2019_v23 }
  0x84   : > { %v668_v43 = vsub.s32 0, %v2017_v18  ;;  %v769_v63 = vshrl.u32 %v2019_v23, 16  ;;  %vm667_vm10 = vcmp.lt.s32.totalorder %v2017_v18, 0  ;;  %v765_v58 = vsel %vm753_vm6, %v747_v48, %v764_v47 }
  0x85   : > { %v792_v22 = vand.u32 65535, %v762_v20  ;;  %v793_v33 = vshrl.u32 %v762_v20, 16  ;;  %v520_v51 = vshll.u32 %v1936_v50, %v518_v45  ;;  %v521_v60 = vshrl.u32 %v503_v31, %v519_v37 }
  0x86   : > { %v2062_v52 = vsel %vm411_vm9, %v533_v34, %v1928_v53  ;;  %v766_v15 = vsel %vm752_vm8, %v763_v62, %v765_v58  ;;  %v383_v30 = vmul.f32 -0.001358992, %v2039_v26  ;;  %v525_v56 = vshll.u32 %v524_v49, 23 }
  0x87   : > { %v770_v7 = vand.u32 65535, %v766_v15  ;;  %v881_v35 = vadd.s32 8, %v880_v39  ;;  %v669_v2 = vsel %vm667_vm10, %v668_v43, %v2017_v18  ;;  %v735_v48 = vshrl.u32 %v1571_v38, %v1970_v54  ;;  %v1434_v54 = vld [vmem:[#allocation5] ss:$0 sm:$0xff] }
  0x88   : > { %v771_v50 = vshrl.u32 %v766_v15, 16  ;;  %v882_v45 = vadd.s32 1, %v880_v39  ;;  %v794_v4 = vmul.u32 %v792_v22, %v768_v59  ;;  %v795_v5 = vmul.u32 %v793_v33, %v768_v59 }
  0x89   : > { %v774_v14 = vmul.u32 %v770_v7, %v769_v63  ;;  %v796_v53 = vmul.u32 %v792_v22, %v769_v63  ;;  %v390_v17 = vmul.f32 -0.00019511016, %v2039_v26  ;;  %v522_v21 = vor.u32 %v521_v60, %v520_v51 }
  0x8a   : > { %v772_v36 = vmul.u32 %v770_v7, %v768_v59  ;;  %v773_v0 = vmul.u32 %v771_v50, %v768_v59  ;;  %v526_v3 = vor.u32 4788187, %v525_v56  ;;  %v670_v24 = vclz %v669_v2 }
  0x8b   : > { %v797_v31 = vmul.u32 %v793_v33, %v769_v63  ;;  %v798_v37 = vshll.u32 %v795_v5, 16  ;;  %v775_v34 = vmul.u32 %v771_v50, %v769_v63  ;;  %v778_v20 = vshll.u32 %v774_v14, 16  ;;  %v1435_v63 = vld [vmem:[%s2539_s2] ss:$0 sm:$0xff] }
  0x8c   : > { %v776_v49 = vshll.u32 %v773_v0, 16  ;;  %v884_v62 = vcvt.s32.f32 %v882_v45  ;;  %v755_v39 = vsel %vm751_vm5, %v735_v48, %v1999_v61  ;;  %v800_v43 = vshll.u32 %v796_v53, 16 }
  0x8d   : > { %vm802_vm11 = vc.u32 %v794_v4, %v798_v37  ;;  %v883_v47 = vadd.s32 1, %v881_v35  ;;  %v756_v59 = vsel %vm754_vm7, %v2007_v32, 2102212464  ;;  %v1346_v33 = vadd.s32 4294967294, %v670_v24 }
  0x8e   : > { %vm780_vm12 = vc.u32 %v772_v36, %v776_v49  ;;  %v782_v58 = vadd.s32 %v776_v49, %v772_v36  ;;  %v803_v22 = vsel %vm802_vm11, 1, %v1577_v1  ;;  %v804_v60 = vadd.s32 %v798_v37, %v794_v4 }
  0x8f   : > { %v781_v51 = vsel %vm780_vm12, 1, %v1577_v1  ;;  %v805_v61 = vadd.s32 %v803_v22, %v797_v31  ;;  %v777_v15 = vshrl.u32 %v773_v0, 16  ;;  %v890_v7 = vmul.f32 %v1434_v54, %v884_v62 }
  0x90   : > { %v783_v56 = vadd.s32 %v781_v51, %v775_v34  ;;  %vm784_vm13 = vc.u32 %v782_v58, %v778_v20  ;;  %v757_v32 = vsel %vm753_vm6, %v2001_v29, %v756_v59  ;;  %v799_v2 = vshrl.u32 %v795_v5, 16 }
  0x91   : > { %v785_v35 = vsel %vm784_vm13, 1, %v1577_v1  ;;  %vm806_vm14 = vc.u32 %v804_v60, %v800_v43  ;;  %v779_v48 = vshrl.u32 %v774_v14, 16  ;;  %v2087_v36 = vadd.f32 %v1435_v63, %v890_v7 }
  0x92   : > { %v787_v50 = vadd.s32 %v785_v35, %v783_v56  ;;  %v807_v45 = vsel %vm806_vm14, 1, %v1577_v1  ;;  %v384_v4 = vadd.f32 0.041655596, %v383_v30  ;;  %v529_v24 = vcvt.s32.f32 %v522_v21 }
  0x93   : > { %v801_v0 = vshrl.u32 %v796_v53, 16  ;;  %v809_v31 = vadd.s32 %v807_v45, %v805_v61  ;;  %vm1347_vm15 = vcmp.lt.s32.totalorder %v1346_v33, 0  ;;  %v2089_v34 = vadd.s32 %v804_v60, %v800_v43 }
  0x94   : > { %v788_v37 = vadd.s32 %v787_v50, %v777_v15  ;;  %v900_v29 = vand.u32 2139095040, %v2087_v36  ;;  %v527_v49 = vand.u32 2147483647, %v526_v3  ;;  %v758_v5 = vsel %vm752_vm8, %v755_v39, %v757_v32 }
  0x95   : > { %v810_v14 = vadd.s32 %v809_v31, %v799_v2  ;;  %v885_v20 = vcvt.s32.f32 %v883_v47  ;;  %vm2096_vm0 = vcmp.le.f32.partialorder %v409_v16, 0.7853982  ;;  %v381_v21 = vsel %vm1990_vm4, 0, %v2031_v25 }
  0x96   : > { %v2100_v30 = vadd.s32 %v788_v37, %v779_v48  ;;  %v901_v53 = vshrl.u32 %v900_v29, 23  ;;  %v391_v43 = vadd.f32 0.008332121, %v390_v17  ;;  %v673_v3 = vsel %vm1347_vm15, 0, %v1346_v33 }
  0x97   : > { %v811_v59 = vadd.s32 %v810_v14, %v801_v0  ;;  %v385_v27 = vmul.f32 %v384_v4, %v2039_v26  ;;  %v536_v39 = vsel %vm2096_vm0, 0, %v2062_v52  ;;  %v812_v16 = vmul.u32 %v2019_v23, %v758_v5 }
  0x98   : > { %vm814_vm1 = vc.u32 %v2100_v30, %v2089_v34  ;;  %v530_v47 = vmul.f32 %v529_v24, %v527_v49  ;;  %v891_v22 = vmul.f32 %v1434_v54, %v885_v20  ;;  %v1351_v51 = vadd.s32 4294967169, %v901_v53 }
  0x99   : > { %v815_v58 = vadd.s32 1, %v811_v59  ;;  %v678_v28 = vsub.s32 4294967266, %v673_v3  ;;  %v392_v25 = vmul.f32 %v391_v43, %v2039_v26  ;;  %v398_v17 = vadd.s32 3, %v381_v21 }
  0x9a   : > { %v907_v60 = vadd.s32 1, %v1351_v51  ;;  %v386_v61 = vadd.f32 -0.4999988, %v385_v27  ;;  %v553_v15 = vadd.s32 3, %v536_v39  ;;  %v658_v52 = vadd.s32 %v1960_v9, %v1958_v8 }
  0x9b   : > { %v816_v33 = vsel %vm814_vm1, %v815_v58, %v811_v59  ;;  %v531_v23 = vxor.u32 2147483648, %v530_v47  ;;  %v674_v7 = vsub.s32 32, %v673_v3  ;;  %v2115_v32 = vadd.f32 %v1435_v63, %v891_v22 }
  0x9c   : > { %v817_v56 = vadd.s32 %v816_v33, %v812_v16  ;;  %vm908_vm2 = vcmp.gt.s32.totalorder %v907_v60, 0  ;;  %v679_v35 = vadd.s32 127, %v678_v28  ;;  %v897_v2 = vand.u32 2147483647, %v2087_v36 }
  0x9d   : > { %v909_v48 = vsel %vm908_vm2, %v907_v60, 0  ;;  %v393_v50 = vadd.f32 -0.16666654, %v392_v25  ;;  %v387_v4 = vmul.f32 %v386_v61, %v2039_v26  ;;  %v2119_v24 = vand.u32 3, %v398_v17 }
  0x9e   : > { %v818_v54 = vadd.s32 536870912, %v817_v56  ;;  %v911_v45 = vand.u32 31, %v909_v48  ;;  %v2121_v0 = vand.u32 3, %v553_v15  ;;  %v675_v9 = vshll.u32 %v2017_v18, %v673_v3 }
  0x9f   : > { %v676_v63 = vshrl.u32 %v658_v52, %v674_v7  ;;  %v1055_v37 = vand.u32 2139095040, %v2115_v32  ;;  %v532_v29 = vsel %vm411_vm9, %v531_v23, %v530_v47  ;;  %v680_v49 = vshll.u32 %v679_v35, 23 }
  0xa0   : > { %v2123_v8 = vshrl.u32 %v818_v54, 30  ;;  %v2126_v31 = vsub.s32 32, %v911_v45  ;;  %v904_v14 = vand.u32 8388607, %v897_v2  ;;  %v394_v20 = vmul.f32 %v393_v50, %v2039_v26 }
  0xa1   : > { %v914_v53 = vshll.u32 %v1571_v38, %v911_v45  ;;  %v917_v18 = vshll.u32 %v1572_v40, %v911_v45  ;;  %v920_v21 = vshll.u32 %v1573_v42, %v911_v45  ;;  %v2149_v26 = vsel %vm2096_vm0, %v1703_v12, %v532_v29 }
  0xa2   : > { %v820_v5 = vshll.u32 %v2123_v8, 30  ;;  %v915_v3 = vshrl.u32 %v1572_v40, %v2126_v31  ;;  %v918_v59 = vshrl.u32 %v1573_v42, %v2126_v31  ;;  %v921_v27 = vshrl.u32 %v1574_v44, %v2126_v31 }
  0xa3   : > { %v677_v39 = vor.u32 %v676_v63, %v675_v9  ;;  %v2151_v16 = vshrl.u32 %v909_v48, 5  ;;  %v1056_v47 = vshrl.u32 %v1055_v37, 23  ;;  %v681_v58 = vor.u32 4788187, %v680_v49 }
  0xa4   : > { %v2138_v43 = vsub.s32 %v817_v56, %v820_v5  ;;  %v905_v51 = vor.u32 8388608, %v904_v14  ;;  %v923_v28 = vshll.u32 %v1574_v44, %v911_v45  ;;  %v924_v25 = vshrl.u32 %v1575_v46, %v2126_v31 }
  0xa5   : > { %v926_v17 = vshll.u32 %v1575_v46, %v911_v45  ;;  %v927_v62 = vshrl.u32 %v1576_v55, %v2126_v31  ;;  %v916_v60 = vor.u32 %v915_v3, %v914_v53  ;;  %v919_v61 = vor.u32 %v918_v59, %v917_v18 }
  0xa6   : > { %vm822_vm3 = vcmp.lt.s32.totalorder %v2138_v43, 0  ;;  %v823_v22 = vsub.s32 0, %v2138_v43  ;;  %v922_v15 = vor.u32 %v921_v27, %v920_v21  ;;  %v925_v56 = vor.u32 %v924_v25, %v923_v28 }
  0xa7   : > { %vm929_vm4 = vcmp.lt.s32.totalorder %v2151_v16, 1  ;;  %v1354_v23 = vadd.s32 4294967169, %v1056_v47  ;;  %v928_v7 = vor.u32 %v927_v62, %v926_v17  ;;  %vm931_vm5 = vcmp.lt.s32.totalorder %v2151_v16, 3 }
  0xa8   : > { %v824_v33 = vsel %vm822_vm3, %v823_v22, %v2138_v43  ;;  %vm932_vm6 = vcmp.lt.s32.totalorder %v2151_v16, 4  ;;  %v2165_v35 = vshll.u32 %v905_v51, 8  ;;  %v2167_v54 = vadd.f32 1.0, %v387_v4 }
  0xa9   : > { %v825_v52 = vclz %v824_v33  ;;  %v684_v48 = vcvt.s32.f32 %v677_v39  ;;  %v938_v45 = vsel %vm932_vm6, %v925_v56, 920167782  ;;  %v682_v9 = vand.u32 2147483647, %v681_v58 }
  0xaa   : > { %vm930_vm7 = vcmp.lt.s32.totalorder %v2151_v16, 2  ;;  %v937_v63 = vsel %vm929_vm4, %v916_v60, %v919_v61  ;;  %v939_v37 = vsel %vm931_vm5, %v922_v15, %v938_v45  ;;  %v2178_v29 = vmul.f32 %v2149_v26, %v2149_v26 }
  0xab   : > { %v1349_v50 = vadd.s32 4294967294, %v825_v52  ;;  %v813_v4 = vadd.s32 %v2089_v34, %v2100_v30  ;;  %v941_v49 = vsel %vm929_vm4, %v919_v61, %v922_v15  ;;  %v942_v14 = vsel %vm932_vm6, %v928_v7, 1326507024 }
  0xac   : > { %v946_v53 = vand.u32 65535, %v2165_v35  ;;  %v1062_v18 = vadd.s32 1, %v1354_v23  ;;  %v940_v59 = vsel %vm930_vm7, %v937_v63, %v939_v37  ;;  %v943_v27 = vsel %vm931_vm5, %v925_v56, %v942_v14 }
  0xad   : > { %vm1350_vm8 = vcmp.lt.s32.totalorder %v1349_v50, 0  ;;  %v538_v34 = vmul.f32 -0.001358992, %v2178_v29  ;;  %v2192_v30 = vmul.f32 %v684_v48, %v682_v9  ;;  %v944_v39 = vsel %vm930_vm7, %v941_v49, %v943_v27 }
  0xae   : > { %v828_v5 = vsel %vm1350_vm8, 0, %v1349_v50  ;;  %v947_v47 = vshrl.u32 %v2165_v35, 16  ;;  %v948_v22 = vand.u32 65535, %v944_v39  ;;  %v949_v51 = vshrl.u32 %v944_v39, 16 }
  0xaf   : > { %v829_v21 = vsub.s32 32, %v828_v5  ;;  %v833_v3 = vsub.s32 4294967266, %v828_v5  ;;  %v970_v28 = vand.u32 65535, %v940_v59  ;;  %v2197_v25 = vadd.f32 1.0, %v394_v20 }
  0xb0   : > { %v545_v17 = vmul.f32 -0.00019511016, %v2178_v29  ;;  %v971_v62 = vshrl.u32 %v940_v59, 16  ;;  %vm1063_vm9 = vcmp.gt.s32.totalorder %v1062_v18, 0  ;;  %v830_v33 = vshll.u32 %v2138_v43, %v828_v5 }
  0xb1   : > { %v834_v58 = vadd.s32 127, %v833_v3  ;;  %v831_v52 = vshrl.u32 %v813_v4, %v829_v21  ;;  %v913_v56 = vshrl.u32 %v1571_v38, %v2126_v31  ;;  %v951_v23 = vmul.u32 %v949_v51, %v946_v53 }
  0xb2   : > { %v539_v7 = vadd.f32 0.041655596, %v538_v34  ;;  %vm566_vm10 = vcmp.lt.s32.totalorder %v1706_v13, 0  ;;  %v686_v48 = vxor.u32 2147483648, %v2192_v30  ;;  %v934_v20 = vsel %vm932_vm6, %v922_v15, 2102212464 }
  0xb3   : > { %v950_v50 = vmul.u32 %v948_v22, %v946_v53  ;;  %v835_v45 = vshll.u32 %v834_v58, 23  ;;  %v952_v9 = vmul.u32 %v948_v22, %v947_v47  ;;  %v974_v63 = vmul.u32 %v970_v28, %v947_v47 }
  0xb4   : > { %v1064_v37 = vsel %vm1063_vm9, %v1062_v18, 0  ;;  %v953_v49 = vmul.u32 %v949_v51, %v947_v47  ;;  %v954_v43 = vshll.u32 %v951_v23, 16  ;;  %v972_v4 = vmul.u32 %v970_v28, %v946_v53 }
  0xb5   : > { %v973_v5 = vmul.u32 %v971_v62, %v946_v53  ;;  %v832_v14 = vor.u32 %v831_v52, %v830_v33  ;;  %v933_v31 = vsel %vm929_vm4, %v913_v56, %v916_v60  ;;  %v935_v21 = vsel %vm931_vm5, %v919_v61, %v934_v20 }
  0xb6   : > { %v956_v3 = vshll.u32 %v952_v9, 16  ;;  %vm958_vm11 = vc.u32 %v950_v50, %v954_v43  ;;  %v960_v59 = vadd.s32 %v954_v43, %v950_v50  ;;  %v975_v15 = vmul.u32 %v971_v62, %v947_v47 }
  0xb7   : > { %v976_v27 = vshll.u32 %v973_v5, 16  ;;  %v836_v34 = vor.u32 4788187, %v835_v45  ;;  %v955_v39 = vshrl.u32 %v951_v23, 16  ;;  %v959_v18 = vsel %vm958_vm11, 1, %v1577_v1 }
  0xb8   : > { %v978_v58 = vshll.u32 %v974_v63, 16  ;;  %vm2214_vm12 = vcmp.le.f32.partialorder %v564_v57, 0.7853982  ;;  %v961_v60 = vadd.s32 %v959_v18, %v953_v49  ;;  %vm962_vm13 = vc.u32 %v960_v59, %v956_v3 }
  0xb9   : > { %vm980_vm14 = vc.u32 %v972_v4, %v976_v27  ;;  %v982_v61 = vadd.s32 %v976_v27, %v972_v4  ;;  %v957_v22 = vshrl.u32 %v952_v9, 16  ;;  %v963_v51 = vsel %vm962_vm13, 1, %v1577_v1 }
  0xba   : > { %v981_v47 = vsel %vm980_vm14, 1, %v1577_v1  ;;  %v1066_v28 = vand.u32 31, %v1064_v37  ;;  %v965_v62 = vadd.s32 %v963_v51, %v961_v60  ;;  %v977_v33 = vshrl.u32 %v973_v5, 16 }
  0xbb   : > { %v983_v52 = vadd.s32 %v981_v47, %v975_v15  ;;  %vm984_vm15 = vc.u32 %v982_v61, %v978_v58  ;;  %v837_v56 = vand.u32 2147483647, %v836_v34  ;;  %v839_v23 = vcvt.s32.f32 %v832_v14 }
  0xbc   : > { %v985_v57 = vsel %vm984_vm15, 1, %v1577_v1  ;;  %v2221_v20 = vsub.s32 32, %v1066_v28  ;;  %v936_v50 = vsel %vm930_vm7, %v933_v31, %v935_v21  ;;  %v966_v45 = vadd.s32 %v965_v62, %v955_v39 }
  0xbd   : > { %v979_v9 = vshrl.u32 %v974_v63, 16  ;;  %v987_v49 = vadd.s32 %v985_v57, %v983_v52  ;;  %v540_v43 = vmul.f32 %v539_v7, %v2178_v29  ;;  %v546_v4 = vadd.f32 0.008332121, %v545_v17 }
  0xbe   : > { %v687_v5 = vsel %vm566_vm10, %v686_v48, %v2192_v30  ;;  %v2229_v3 = vadd.s32 %v982_v61, %v978_v58  ;;  %v2231_v14 = vadd.s32 %v966_v45, %v957_v22  ;;  %v2543_v15 = vand.u32 2147483647, %v2115_v32 }
  0xbf   : > { %v988_v59 = vadd.s32 %v987_v49, %v977_v33  ;;  %v2234_v27 = vshrl.u32 %v1064_v37, 5  ;;  %v840_v16 = vmul.f32 %v839_v23, %v837_v56  ;;  %v990_v63 = vmul.u32 %v2165_v35, %v936_v50 }
  0xc0   : > { %v1069_v31 = vshll.u32 %v1571_v38, %v1066_v28  ;;  %v1070_v17 = vshrl.u32 %v1572_v40, %v2221_v20  ;;  %v1072_v30 = vshll.u32 %v1572_v40, %v1066_v28  ;;  %v1073_v48 = vshrl.u32 %v1573_v42, %v2221_v20 }
  0xc1   : > { %v989_v7 = vadd.s32 %v988_v59, %v979_v9  ;;  %v1075_v21 = vshll.u32 %v1573_v42, %v1066_v28  ;;  %vm992_vm0 = vc.u32 %v2231_v14, %v2229_v3  ;;  %v1076_v37 = vshrl.u32 %v1574_v44, %v2221_v20 }
  0xc2   : > { %v1078_v35 = vshll.u32 %v1574_v44, %v1066_v28  ;;  %v1079_v34 = vshrl.u32 %v1575_v46, %v2221_v20  ;;  %v1059_v40 = vand.u32 8388607, %v2543_v15  ;;  %v1081_v18 = vshll.u32 %v1575_v46, %v1066_v28 }
  0xc3   : > { %v993_v39 = vadd.s32 1, %v989_v7  ;;  %v1082_v42 = vshrl.u32 %v1576_v55, %v2221_v20  ;;  %v2259_v58 = vsel %vm2214_vm12, %v1706_v13, %v687_v5  ;;  %vm721_vm1 = vcmp.lt.s32.totalorder %v1941_v6, 0 }
  0xc4   : > { %v841_v44 = vxor.u32 2147483648, %v840_v16  ;;  %v2262_v60 = vor.u32 %v1070_v17, %v1069_v31  ;;  %v2264_v22 = vor.u32 %v1073_v48, %v1072_v30  ;;  %v1080_v51 = vor.u32 %v1079_v34, %v1078_v35 }
  0xc5   : > { %v994_v61 = vsel %vm992_vm0, %v993_v39, %v989_v7  ;;  %v1083_v47 = vor.u32 %v1082_v42, %v1081_v18  ;;  %v2266_v46 = vor.u32 %v1076_v37, %v1075_v21  ;;  %vm1084_vm2 = vcmp.lt.s32.totalorder %v2234_v27, 1 }
  0xc6   : > { %v995_v62 = vadd.s32 %v994_v61, %v990_v63  ;;  %vm1087_vm3 = vcmp.lt.s32.totalorder %v2234_v27, 4  ;;  %v2272_v55 = vmul.f32 %v2197_v25, %v2013_v10  ;;  %v547_v28 = vmul.f32 %v546_v4, %v2178_v29 }
  0xc7   : > { %v1060_v33 = vor.u32 8388608, %v1059_v40  ;;  %vm1086_vm4 = vcmp.lt.s32.totalorder %v2234_v27, 3  ;;  %v2278_v52 = vmul.f32 %v2259_v58, %v2259_v58  ;;  %vm2282_vm5 = vcmp.le.f32.partialorder %v719_v19, 0.7853982 }
  0xc8   : > { %v842_v23 = vsel %vm721_vm1, %v841_v44, %v840_v16  ;;  %v996_v10 = vadd.s32 536870912, %v995_v62  ;;  %vm1085_vm6 = vcmp.lt.s32.totalorder %v2234_v27, 2  ;;  %v1092_v25 = vsel %vm1084_vm2, %v2262_v60, %v2264_v22 }
  0xc9   : > { %v1093_v57 = vsel %vm1087_vm3, %v1080_v51, 920167782  ;;  %v1097_v19 = vsel %vm1087_vm3, %v1083_v47, 1326507024  ;;  %v541_v50 = vadd.f32 -0.4999988, %v540_v43  ;;  %v1096_v49 = vsel %vm1084_vm2, %v2264_v22, %v2266_v46 }
  0xca   : > { %v2297_v45 = vshrl.u32 %v996_v10, 30  ;;  %v1094_v9 = vsel %vm1086_vm4, %v2266_v46, %v1093_v57  ;;  %v693_v5 = vmul.f32 -0.001358992, %v2278_v52  ;;  %v1098_v59 = vsel %vm1086_vm4, %v1080_v51, %v1097_v19 }
  0xcb   : > { %v2310_v16 = vshll.u32 %v1060_v33, 8  ;;  %v700_v43 = vmul.f32 -0.00019511016, %v2278_v52  ;;  %v2316_v63 = vsel %vm2282_vm5, %v1941_v6, %v842_v23  ;;  %v1095_v17 = vsel %vm1085_vm6, %v1092_v25, %v1094_v9 }
  0xcc   : > { %v998_v31 = vshll.u32 %v2297_v45, 30  ;;  %v548_v7 = vadd.f32 -0.16666654, %v547_v28  ;;  %v1099_v30 = vsel %vm1085_vm6, %v1096_v49, %v1098_v59  ;;  %v2327_v35 = vmul.f32 %v541_v50, %v2178_v29 }
  0xcd   : > { %v1101_v48 = vand.u32 65535, %v2310_v16  ;;  %v1102_v21 = vshrl.u32 %v2310_v16, 16  ;;  %v688_v34 = vsub.s32 4, %v1972_v41  ;;  %v2332_v40 = vmul.f32 %v2316_v63, %v2316_v63 }
  0xce   : > { %v999_v39 = vsub.s32 %v995_v62, %v998_v31  ;;  %v1103_v18 = vand.u32 65535, %v1099_v30  ;;  %v1104_v42 = vshrl.u32 %v1099_v30, 16  ;;  %v1126_v44 = vshrl.u32 %v1095_v17, 16 }
  0xcf   : > { %v694_v61 = vadd.f32 0.041655596, %v693_v5  ;;  %v701_v51 = vadd.f32 0.008332121, %v700_v43  ;;  %v2335_v28 = vmul.f32 %v548_v7, %v2178_v29  ;;  %v2342_v62 = vsel %vm566_vm10, %v688_v34, %v1972_v41 }
  0xd0   : > { %vm1000_vm7 = vcmp.lt.s32.totalorder %v999_v39, 0  ;;  %v1001_v47 = vsub.s32 0, %v999_v39  ;;  %v1105_v33 = vmul.u32 %v1103_v18, %v1101_v48  ;;  %v1106_v23 = vmul.u32 %v1104_v42, %v1101_v48 }
  0xd1   : > { %v2337_v10 = vmul.u32 %v1103_v18, %v1102_v21  ;;  %v1125_v57 = vand.u32 65535, %v1095_v17  ;;  %v2344_v19 = vmul.u32 %v1126_v44, %v1101_v48  ;;  %v855_v50 = vmul.f32 -0.00019511016, %v2332_v40 }
  0xd2   : > { %v1002_v25 = vsel %vm1000_vm7, %v1001_v47, %v999_v39  ;;  %v1108_v49 = vmul.u32 %v1104_v42, %v1102_v21  ;;  %v1109_v5 = vshll.u32 %v1106_v23, 16  ;;  %v695_v29 = vmul.f32 %v694_v61, %v2278_v52 }
  0xd3   : > { %v1003_v9 = vclz %v1002_v25  ;;  %v702_v59 = vmul.f32 %v701_v51, %v2278_v52  ;;  %v848_v43 = vmul.f32 -0.001358992, %v2332_v40  ;;  %v1111_v31 = vshll.u32 %v2337_v10, 16 }
  0xd4   : > { %v991_v41 = vadd.s32 %v2229_v3, %v2231_v14  ;;  %vm1113_vm8 = vc.u32 %v1105_v33, %v1109_v5  ;;  %v1115_v17 = vadd.s32 %v1109_v5, %v1105_v33  ;;  %v1127_v34 = vmul.u32 %v1125_v57, %v1101_v48 }
  0xd5   : > { %v1352_v7 = vadd.s32 4294967294, %v1003_v9  ;;  %v1114_v30 = vsel %vm1113_vm8, 1, %v1577_v1  ;;  %v1129_v18 = vmul.u32 %v1125_v57, %v1102_v21  ;;  %v1131_v42 = vshll.u32 %v2344_v19, 16 }
  0xd6   : > { %v856_v47 = vadd.f32 0.008332121, %v855_v50  ;;  %v1116_v61 = vadd.s32 %v1114_v30, %v1108_v49  ;;  %vm1117_vm10 = vc.u32 %v1115_v17, %v1111_v31  ;;  %v1110_v25 = vshrl.u32 %v1106_v23, 16 }
  0xd7   : > { %vm1353_vm9 = vcmp.lt.s32.totalorder %v1352_v7, 0  ;;  %v1118_v15 = vsel %vm1117_vm10, 1, %v1577_v1  ;;  %v1130_v37 = vmul.u32 %v1126_v44, %v1102_v21  ;;  %v843_v33 = vsub.s32 4, %v2123_v8 }
  0xd8   : > { %v1006_v51 = vsel %vm1353_vm9, 0, %v1352_v7  ;;  %v1120_v9 = vadd.s32 %v1118_v15, %v1116_v61  ;;  %v1068_v48 = vshrl.u32 %v1571_v38, %v2221_v20  ;;  %v1133_v57 = vshll.u32 %v1129_v18, 16 }
  0xd9   : > { %v1007_v4 = vsub.s32 32, %v1006_v51  ;;  %v1008_v3 = vshll.u32 %v999_v39, %v1006_v51  ;;  %v1011_v14 = vsub.s32 4294967266, %v1006_v51  ;;  %vm1135_vm11 = vc.u32 %v1127_v34, %v1131_v42 }
  0xda   : > { %v849_v50 = vadd.f32 0.041655596, %v848_v43  ;;  %v1136_v31 = vsel %vm1135_vm11, 1, %v1577_v1  ;;  %v857_v23 = vmul.f32 %v856_v47, %v2332_v40  ;;  %v1089_v21 = vsel %vm1087_vm3, %v2266_v46, 2102212464 }
  0xdb   : > { %v1009_v5 = vshrl.u32 %v991_v41, %v1007_v4  ;;  %v1012_v49 = vadd.s32 127, %v1011_v14  ;;  %v1137_v39 = vadd.s32 %v1131_v42, %v1127_v34  ;;  %v1138_v15 = vadd.s32 %v1136_v31, %v1130_v37 }
  0xdc   : > { %v1112_v17 = vshrl.u32 %v2337_v10, 16  ;;  %v1121_v38 = vadd.s32 %v1120_v9, %v1110_v25  ;;  %vm404_vm13 = vcmp.eq.s32.totalorder %v2119_v24, 2  ;;  %v703_v20 = vadd.f32 -0.16666654, %v702_v59 }
  0xdd   : > { %v1010_v44 = vor.u32 %v1009_v5, %v1008_v3  ;;  %v1013_v7 = vshll.u32 %v1012_v49, 23  ;;  %v1088_v4 = vsel %vm1084_vm2, %v1068_v48, %v2262_v60  ;;  %v1132_v43 = vshrl.u32 %v2344_v19, 16 }
  0xde   : > { %vm1139_vm14 = vc.u32 %v1137_v39, %v1133_v57  ;;  %vm401_vm15 = vcmp.eq.s32.totalorder %v2119_v24, 0  ;;  %v1090_v37 = vsel %vm1086_vm4, %v2264_v22, %v1089_v21  ;;  %v844_v59 = vsel %vm721_vm1, %v843_v33, %v2123_v8 }
  0xdf   : > { %v1014_v46 = vor.u32 4788187, %v1013_v7  ;;  %v1017_v41 = vcvt.s32.f32 %v1010_v44  ;;  %v1140_v10 = vsel %vm1139_vm14, 1, %v1577_v1  ;;  %v850_v30 = vmul.f32 %v849_v50, %v2332_v40 }
  0xe0   : > { %v1134_v60 = vshrl.u32 %v1129_v18, 16  ;;  %v1142_v34 = vadd.s32 %v1140_v10, %v1138_v15  ;;  %v858_v19 = vadd.f32 -0.16666654, %v857_v23  ;;  %v2379_v47 = vadd.s32 %v1121_v38, %v1112_v17 }
  0xe1   : > { %v1015_v42 = vand.u32 2147483647, %v1014_v46  ;;  %v2381_v61 = vadd.s32 %v1137_v39, %v1133_v57  ;;  %v691_v22 = vsel %vm2214_vm12, 0, %v2342_v62  ;;  %v696_v51 = vadd.f32 -0.4999988, %v695_v29 }
  0xe2   : > { %v1091_v1 = vsel %vm1085_vm6, %v1088_v4, %v1090_v37  ;;  %v1143_v25 = vadd.s32 %v1142_v34, %v1132_v43  ;;  %vm559_vm0 = vcmp.eq.s32.totalorder %v2121_v0, 2  ;;  %v704_v8 = vmul.f32 %v703_v20, %v2278_v52 }
  0xe3   : > { %v846_v18 = vsel %vm2282_vm5, 0, %v844_v59  ;;  %vm2394_vm1 = vcmp.le.f32.partialorder %v897_v2, 0.7853982  ;;  %v1018_v53 = vmul.f32 %v1017_v41, %v1015_v42  ;;  %v851_v62 = vadd.f32 -0.4999988, %v850_v30 }
  0xe4   : > { %vm899_vm12 = vcmp.lt.s32.totalorder %v2087_v36, 0  ;;  %v1021_v27 = vsub.s32 4, %v2297_v45  ;;  %v1144_v29 = vadd.s32 %v1143_v25, %v1134_v60  ;;  %v859_v14 = vmul.f32 %v858_v19, %v2332_v40 }
  0xe5   : > { %v1019_v9 = vxor.u32 2147483648, %v1018_v53  ;;  %v1145_v33 = vmul.u32 %v2310_v16, %v1091_v1  ;;  %vm1147_vm2 = vc.u32 %v2379_v47, %v2381_v61  ;;  %v543_v2 = vadd.f32 1.0, %v2327_v35 }
  0xe6   : > { %v550_v56 = vadd.f32 1.0, %v2335_v28  ;;  %v708_v48 = vadd.s32 3, %v691_v22  ;;  %v1148_v57 = vadd.s32 1, %v1144_v29  ;;  %vm556_vm3 = vcmp.eq.s32.totalorder %v2121_v0, 0 }
  0xe7   : > { %v697_v50 = vmul.f32 %v696_v51, %v2278_v52  ;;  %v705_v5 = vadd.f32 1.0, %v704_v8  ;;  %v863_v49 = vadd.s32 3, %v846_v18  ;;  %v1020_v31 = vsel %vm899_vm12, %v1019_v9, %v1018_v53 }
  0xe8   : > { %v852_v16 = vmul.f32 %v851_v62, %v2332_v40  ;;  %v1022_v23 = vsel %vm899_vm12, %v1021_v27, %v2297_v45  ;;  %v2417_v35 = vsel %vm2394_vm1, %v2087_v36, %v1020_v31  ;;  %v1149_v28 = vsel %vm1147_vm2, %v1148_v57, %v1144_v29 }
  0xe9   : > { %v2557_v52 = vxor.u32 2147483648, %v2167_v54  ;;  %v860_v39 = vadd.f32 1.0, %v859_v14  ;;  %v1025_v40 = vmul.f32 %v2417_v35, %v2417_v35  ;;  %v1150_v15 = vadd.s32 %v1149_v28, %v1145_v33 }
  0xea   : > { %v2558_v44 = vxor.u32 2147483648, %v2272_v55  ;;  %v551_v7 = vmul.f32 %v550_v56, %v2149_v26  ;;  %v560_v17 = vxor.u32 2147483648, %v543_v2  ;;  %v709_v38 = vand.u32 3, %v708_v48 }
  0xeb   : > { %v406_v21 = vsel %vm404_vm13, %v2557_v52, %v2272_v55  ;;  %vm400_vm4 = vcmp.lt.s32.totalorder %v2119_v24, 2  ;;  %vm555_vm5 = vcmp.lt.s32.totalorder %v2121_v0, 2  ;;  %v1024_v20 = vsel %vm2394_vm1, 0, %v1022_v23 }
  0xec   : > { %v403_v45 = vsel %vm401_vm15, %v2167_v54, %v2558_v44  ;;  %v1026_v4 = vmul.f32 -0.001358992, %v1025_v40  ;;  %v1033_v43 = vmul.f32 -0.00019511016, %v1025_v40  ;;  %v1151_v46 = vadd.s32 536870912, %v1150_v15 }
  0xed   : > { %v698_v41 = vadd.f32 1.0, %v697_v50  ;;  %v706_v55 = vmul.f32 %v705_v5, %v2259_v58  ;;  %v853_v37 = vadd.f32 1.0, %v852_v16  ;;  %v864_v10 = vand.u32 3, %v863_v49 }
  0xee   : > { %v861_v54 = vmul.f32 %v860_v39, %v2316_v63  ;;  %v1027_v26 = vadd.f32 0.041655596, %v1026_v4  ;;  %v1034_v59 = vadd.f32 0.008332121, %v1033_v43  ;;  %v2438_v30 = vshrl.u32 %v1151_v46, 30 }
  0xef   : > { %vm397_vm6 = vweird.f32 %v1700_v11  ;;  %v557_v60 = vxor.u32 2147483648, %v551_v7  ;;  %v561_v34 = vsel %vm559_vm0, %v560_v17, %v551_v7  ;;  %vm711_vm7 = vcmp.eq.s32.totalorder %v709_v38, 0 }
  0xf0   : > { %v1041_v19 = vadd.s32 3, %v1024_v20  ;;  %vm552_vm8 = vweird.f32 %v1703_v12  ;;  %vm714_vm9 = vcmp.eq.s32.totalorder %v709_v38, 2  ;;  %v1028_v58 = vmul.f32 %v1027_v26, %v1025_v40 }
  0xf1   : > { %v1035_v42 = vmul.f32 %v1034_v59, %v1025_v40  ;;  %v1153_v22 = vshll.u32 %v2438_v30, 30  ;;  %v712_v63 = vxor.u32 2147483648, %v706_v55  ;;  %v715_v51 = vxor.u32 2147483648, %v698_v41 }
  0xf2   : > { %vm869_vm10 = vcmp.eq.s32.totalorder %v864_v10, 2  ;;  %v870_v1 = vxor.u32 2147483648, %v853_v37  ;;  %v867_v25 = vxor.u32 2147483648, %v861_v54  ;;  %v1029_v8 = vadd.f32 -0.4999988, %v1028_v58 }
  0xf3   : > { %v1036_v18 = vadd.f32 -0.16666654, %v1035_v42  ;;  %v1154_v3 = vsub.s32 %v1150_v15, %v1153_v22  ;;  %v558_v53 = vsel %vm556_vm3, %v543_v2, %v557_v60  ;;  %vm710_vm11 = vcmp.lt.s32.totalorder %v709_v38, 2 }
  0xf4   : > { %vm866_vm13 = vcmp.eq.s32.totalorder %v864_v10, 0  ;;  %v1042_v62 = vand.u32 3, %v1041_v19  ;;  %v1030_v27 = vmul.f32 %v1029_v8, %v1025_v40  ;;  %v713_v9 = vsel %vm711_vm7, %v698_v41, %v712_v63 }
  0xf5   : > { %v1037_v29 = vmul.f32 %v1036_v18, %v1025_v40  ;;  %vm1155_vm14 = vcmp.lt.s32.totalorder %v1154_v3, 0  ;;  %v1156_v14 = vsub.s32 0, %v1154_v3  ;;  %v716_v33 = vsel %vm714_vm9, %v715_v51, %v706_v55 }
  0xf6   : > { %vm865_vm15 = vcmp.lt.s32.totalorder %v864_v10, 2  ;;  %v871_v56 = vsel %vm869_vm10, %v870_v1, %v861_v54  ;;  %v868_v48 = vsel %vm866_vm13, %v853_v37, %v867_v25  ;;  %v1031_v57 = vadd.f32 1.0, %v1030_v27 }
  0xf7   : > { %v1038_v50 = vadd.f32 1.0, %v1037_v29  ;;  %v1157_v5 = vsel %vm1155_vm14, %v1156_v14, %v1154_v3  ;;  %v407_v2 = vsel %vm400_vm4, %v403_v45, %v406_v21  ;;  %v562_v49 = vsel %vm555_vm5, %v558_v53, %v561_v34 }
  0xf8   : > { %vm1047_vm0 = vcmp.eq.s32.totalorder %v1042_v62, 2  ;;  %v1158_v31 = vclz %v1157_v5  ;;  %vm707_vm1 = vweird.f32 %v1706_v13  ;;  %v717_v16 = vsel %vm710_vm11, %v713_v9, %v716_v33 }
  0xf9   : > { %v1039_v23 = vmul.f32 %v1038_v50, %v2417_v35  ;;  %v1048_v28 = vxor.u32 2147483648, %v1031_v57  ;;  %vm862_vm12 = vweird.f32 %v1941_v6  ;;  %v872_v52 = vsel %vm865_vm15, %v868_v48, %v871_v56  ;;  %v874_v35 = vld [vmem:[%s2540_s3] sm:$0x1] }
  0xfa   : > { %vm1044_vm2 = vcmp.eq.s32.totalorder %v1042_v62, 0  ;;  %v1355_v39 = vadd.s32 4294967294, %v1158_v31  ;;  %v408_v24 = vsel %vm397_vm6, nan, %v407_v2  ;;  %vm1043_vm3 = vcmp.lt.s32.totalorder %v1042_v62, 2 }
  0xfb   : > { %v1045_v0 = vxor.u32 2147483648, %v1039_v23  ;;  %v1049_v21 = vsel %vm1047_vm0, %v1048_v28, %v1039_v23  ;;  %v563_v13 = vsel %vm552_vm8, nan, %v562_v49  ;;  %v718_v40 = vsel %vm707_vm1, nan, %v717_v16 }
  0xfc   : > { %v1146_v6 = vadd.s32 %v2381_v61, %v2379_v47  ;;  %vm1356_vm4 = vcmp.lt.s32.totalorder %v1355_v39, 0  ;;  %v873_v15 = vsel %vm862_vm12, nan, %v872_v52  ;;  %vm1040_vm5 = vweird.f32 %v2087_v36  ;;  %v1436_v36 = vld [vmem:[%s2541_s4] ss:$0 sm:$0xff] }
  0xfd   : > { %v1046_v11 = vsel %vm1044_vm2, %v1031_v57, %v1045_v0  ;;  %v1161_v44 = vsel %vm1356_vm4, 0, %v1355_v39  ;;  %v2469_v38 = vmul.f32 %v874_v35, %v408_v24  ;;  %v2471_v20 = vmul.f32 %v874_v35, %v563_v13 }
  0xfe   : > { %v1050_v45 = vsel %vm1043_vm3, %v1046_v11, %v1049_v21  ;;  %v1162_v7 = vsub.s32 32, %v1161_v44  ;;  %v1163_v12 = vshll.u32 %v1154_v3, %v1161_v44  ;;  %v1166_v17 = vsub.s32 4294967266, %v1161_v44 }
  0xff   : > { %v2473_v4 = vmul.f32 %v874_v35, %v718_v40  ;;  %v2475_v43 = vmul.f32 %v874_v35, %v873_v15  ;;  %v1051_v47 = vsel %vm1040_vm5, nan, %v1050_v45  ;;  %v1217_v10 = vperm.slane %v2469_v38, 0 }
 0x100   : > { %v1164_v61 = vshrl.u32 %v1146_v6, %v1162_v7  ;;  %v1167_v46 = vadd.s32 127, %v1166_v17  ;;  %v1211_v37 = vmul.f32 %v1436_v36, %v1051_v47  ;;  %v1218_v54 = vperm.slane %v2471_v20, 0 }
 0x101   : > { %v1219_v26 = vperm.slane %v2473_v4, 0  ;;  %v1220_v34 = vperm.slane %v2475_v43, 0  ;;  %vm1054_vm6 = vcmp.lt.s32.totalorder %v2115_v32, 0  ;;  %v1176_v1 = vsub.s32 4, %v2438_v30 }
 0x102   : > { %v1165_v41 = vor.u32 %v1164_v61, %v1163_v12  ;;  %v1168_v55 = vshll.u32 %v1167_v46, 23  ;;  %v1225_v19 = vadd.f32 %v1217_v10, %v1211_v37  ;;  %v1227_v58 = vadd.f32 %v1218_v54, %v1211_v37 }
 0x103   : > { %v1229_v42 = vadd.f32 %v1219_v26, %v1211_v37  ;;  %v1231_v63 = vadd.f32 %v1220_v34, %v1211_v37  ;;  %v2559_v25 = vand.u32 2147483647, %v2115_v32  ;;  %v1177_v3 = vsel %vm1054_vm6, %v1176_v1, %v2438_v30 }
 0x104   : > { %v1169_v59 = vor.u32 4788187, %v1168_v55  ;;  %v1172_v60 = vcvt.s32.f32 %v1165_v41  ;;  %1233 = vst [vmem:[%s2486_s12] sm:$0xff] %v1225_v19  ;;  %vm1195_vm11 = vweird.f32 %v2115_v32 }
 0x105   : > { %1235 = vst [vmem:[%s2486_s12 + $0x10] sm:$0xff] %v1227_v58  ;;  %vm1053_vm7 = vcmp.le.f32.partialorder %v2559_v25, 0.7853982 }
 0x106   : > { %v1170_v22 = vand.u32 2147483647, %v1169_v59  ;;  %1237 = vst [vmem:[%s2486_s12 + $0x20] sm:$0xff] %v1229_v42  ;;  %v1179_v27 = vsel %vm1053_vm7, 0, %v1177_v3 }
 0x107   : > { %1239 = vst [vmem:[%s2486_s12 + $0x30] sm:$0xff] %v1231_v63  ;;  %v1196_v56 = vadd.s32 3, %v1179_v27 }
 0x108   : > { %v1173_v51 = vmul.f32 %v1172_v60, %v1170_v22 }
 0x109   : > { %v1197_v2 = vand.u32 3, %v1196_v56 }
 0x10a   : > { %v1174_v8 = vxor.u32 2147483648, %v1173_v51 }
 0x10b   : > { %vm1202_vm8 = vcmp.eq.s32.totalorder %v1197_v2, 2  ;;  %vm1199_vm9 = vcmp.eq.s32.totalorder %v1197_v2, 0  ;;  %vm1198_vm10 = vcmp.lt.s32.totalorder %v1197_v2, 2 }
 0x10c   : > { %v1175_v18 = vsel %vm1054_vm6, %v1174_v8, %v1173_v51 }
 0x10d   : > { %v1178_v53 = vsel %vm1053_vm7, %v2115_v32, %v1175_v18 }
 0x10e   : > { %v1180_v62 = vmul.f32 %v1178_v53, %v1178_v53 }
 0x110   : > { %v1181_v29 = vmul.f32 -0.001358992, %v1180_v62  ;;  %v1188_v14 = vmul.f32 -0.00019511016, %v1180_v62 }
 0x112   : > { %v1182_v9 = vadd.f32 0.041655596, %v1181_v29  ;;  %v1189_v33 = vadd.f32 0.008332121, %v1188_v14 }
 0x114   : > { %v1183_v48 = vmul.f32 %v1182_v9, %v1180_v62  ;;  %v1190_v57 = vmul.f32 %v1189_v33, %v1180_v62 }
 0x116   : > { %v1184_v50 = vadd.f32 -0.4999988, %v1183_v48  ;;  %v1191_v5 = vadd.f32 -0.16666654, %v1190_v57 }
 0x118   : > { %v1185_v49 = vmul.f32 %v1184_v50, %v1180_v62  ;;  %v1192_v31 = vmul.f32 %v1191_v5, %v1180_v62 }
 0x11a   : > { %v1186_v16 = vadd.f32 1.0, %v1185_v49  ;;  %v1193_v30 = vadd.f32 1.0, %v1192_v31 }
 0x11c   : > { %v1194_v23 = vmul.f32 %v1193_v30, %v1178_v53  ;;  %v1203_v28 = vxor.u32 2147483648, %v1186_v16 }
 0x11e   : > { %v1200_v52 = vxor.u32 2147483648, %v1194_v23  ;;  %v1204_v39 = vsel %vm1202_vm8, %v1203_v28, %v1194_v23 }
 0x120   : > { %v1201_v24 = vsel %vm1199_vm9, %v1186_v16, %v1200_v52 }
 0x121   : > { %v1205_v0 = vsel %vm1198_vm10, %v1201_v24, %v1204_v39 }
 0x122   : > { %v1206_v21 = vsel %vm1195_vm11, nan, %v1205_v0 }
 0x123   : > { %v1212_v13 = vmul.f32 %v1436_v36, %v1206_v21 }
 0x125   : > { %v1226_v40 = vadd.f32 %v1217_v10, %v1212_v13  ;;  %v1228_v35 = vadd.f32 %v1218_v54, %v1212_v13  ;;  %v1230_v6 = vadd.f32 %v1219_v26, %v1212_v13  ;;  %v1232_v15 = vadd.f32 %v1220_v34, %v1212_v13 }
 0x127   : > { %1234 = vst [vmem:[%s2486_s12 + $0x8] sm:$0xff] %v1226_v40 }
 0x128   : > { %1236 = vst [vmem:[%s2486_s12 + $0x18] sm:$0xff] %v1228_v35 }
 0x129   : > { %1238 = vst [vmem:[%s2486_s12 + $0x28] sm:$0xff] %v1230_v6 }
 0x12a   : > { %1240 = vst [vmem:[%s2486_s12 + $0x38] sm:$0xff] %v1232_v15 }
 0x12b   : > { %1524 = shalt.err (!%p1521_p7)
}
 0x12c   : > { %s1578_s8 = smov 128   ;;  %s1579_s11 = smov 8  }
 0x12d   : > { %1373 = dma.vmem_to_hbm [thread:$0]  (%p1648_p5), %s1256_s17, 1024, %s1258_s23, %s1242_s22, %s1578_s8, %s1578_s8, %s1579_s11  }
 0x12e PF: > { %p1390_p8 = scmp.ge.s32.totalorder %s1567_s21, 2  ;;  %s1272_s12 = sand.u32 1, %s1555_s18  }
 0x12f   : > { %s1273_s13 = scalar_lea.sflag [#allocation4], %s1272_s12 }
 0x130   : > { %p1383_p9 = pnand %p1390_p8, %p1652_p6 }
 0x132   : > { %p1384_p10 = pneg %p1383_p9 }
 0x134   : > { %1550 = dma.done.wait (%p1384_p10), %s1273_s13, 1024  }
 0x135   : > { %1552 = vsyncadd (%p1384_p10), %s1273_s13, 4294966272  ;;  %p17_p11 = scmp.ge.s32.totalorder %s1635_s24, 4   ;;  %s2560_s18 = smov %s1559_s19 }
 0x136   : > { %s2561_s19 = smov %s1563_s20  ;;  %s2562_s20 = smov %s1646_s27 }
 0x137   : > { %s2563_s21 = smov %s1635_s24  ;;  %19 = sbr.rel (!%p17_p11) target bundleno = 5 (0x5), region = 81 }
 0x13c   :  { %1279 = vsyncpa [#allocation3], 1 }
 0x13d   :  { %1281 = vsyncpa [#allocation3 + $0x1], 1 }
 0x13e   :  { %1282 = vsyncpa [#allocation6], 1 }
 0x13f   :  { %1283 = vsyncpa [#allocation4], 1 }
 0x140   :  { %1285 = vsyncpa [#allocation4 + $0x1], 1 }

</bundles_post_ra>
